<compile_context>
chip_gen: v6e
topology: v6e:2x2x1
jax: 0.10.0
libtpu: 0.0.40
codegen_flags: <defaults>
</compile_context>

<pallas_src>
import functools

import jax
import jax.numpy as jnp
import numpy as np
from jax import lax
from jax.experimental import pallas as pl
from jax.experimental.pallas import tpu as pltpu


def _self_attn_kernel(q_ref, k_ref, v_ref, x_ref, out_ref, attn_ref=None, *,
                      write_attn):
    """One (batch, query-tile) grid point of the SAGAN attention.

    q_ref:    (1, Cq, TQ)  ReLU(query) tile, channel-major, compute dtype (bf16/f32)
    k_ref:    (1, Cq, N)   ReLU(key) full row for this batch
    v_ref:    (1, C, N)    gamma * ReLU(value) full row for this batch
    x_ref:    (1, C, TQ)   residual tile (f32)
    out_ref:  (1, C, TQ)   gamma * attn(V) + x
    attn_ref: (1, TQ, N)   softmax attention rows (optional output)
    """
    q = q_ref[0]                                        # (Cq, TQ)
    k = k_ref[0]                                        # (Cq, N)
    v = v_ref[0]                                        # (C, N)

    # energy[i, j] = <q[:, i], k[:, j]>  -- transposed-lhs MXU contraction (no
    # materialized (TQ, Cq) transpose); zero-padded channels contribute exactly 0.
    energy = lax.dot_general(q, k, (((0,), (0,)), ((), ())),
                             preferred_element_type=jnp.float32)       # (TQ, N)

    # Row softmax (torch.softmax(dim=-1)); elementwise math stays in f32.
    m = jnp.max(energy, axis=-1, keepdims=True)
    p = jnp.exp(energy - m)
    inv = 1.0 / jnp.sum(p, axis=-1, keepdims=True)      # exact divide: only (TQ, 1) values
    attn = p * inv                                      # (TQ, N) f32

    # out[c, i] = sum_j v[c, j] * attn[i, j]  -- rhs-transposed MXU contraction with the
    # probability tile cast to the compute dtype (f32 accumulation).
    out = lax.dot_general(v, attn.astype(v.dtype), (((1,), (1,)), ((), ())),
                          preferred_element_type=jnp.float32)          # (C, TQ)

    out_ref[0] = out + x_ref[0]                         # gamma already folded into v
    if write_attn:
        attn_ref[0] = attn.astype(attn_ref.dtype)


def _physical_vmem_bytes():
    """Per-core VMEM of the attached TPU; conservative fallback for unknown chips."""
    kind = ""
    try:
        kind = jax.devices()[0].device_kind.lower()
    except Exception:
        pass
    if "v2" in kind or "v3" in kind:
        return 16 << 20
    if "v4" in kind or "v5" in kind or "v6" in kind:
        return 128 << 20
    return 64 << 20           # v7x (64 MiB) and anything unrecognized: be conservative


def _pick_query_tile(n, c, cq, attn_bytes, compute_bytes, budget):
    """Largest lane-dense query tile whose live VMEM footprint fits the budget."""

    def vmem_need(tq):
        need = 2 * tq * n * attn_bytes          # attention out block (double-buffered)
        need += 2 * c * tq * 4                  # out block           (double-buffered)
        need += 2 * c * tq * 4                  # x residual block    (double-buffered)
        need += 2 * cq * tq * compute_bytes     # q tile              (double-buffered)
        need += 2 * cq * n * compute_bytes      # k full row          (double-buffered)
        need += 2 * c * n * compute_bytes       # v full row          (double-buffered)
        need += 3 * tq * n * 4                  # live f32 temporaries (energy / p / attn)
        return need

    cands = [t for t in (512, 256, 128) if n % t == 0]               # lane-dense first
    cands += [t for t in range(min(n, 512), 7, -8)
              if n % t == 0 and t not in cands]                      # then any /8 divisor
    for t in cands:
        if vmem_need(t) <= budget:
            return t
    return cands[-1] if cands else n


@functools.partial(jax.jit,
                   static_argnames=("output_attention", "attn_dtype", "compute_dtype"))
def self_attn_pallas(x_nchw, wq, bq, wk, bk, wv, bv, gamma, *,
                     output_attention=True,
                     attn_dtype=jnp.float32,
                     compute_dtype=jnp.bfloat16):
    """SelfAttn forward (activation = ReLU).

    Returns (out NCHW, attention (B, N, N)) when output_attention=True, else just out
    (mirrors the module's forward_outputs_attention flag).
    """
    B, C, W, H = x_nchw.shape
    N = W * H
    Cq = wq.shape[0]
    cq_pad = ((Cq + 7) // 8) * 8        # minimal sublane-aligned padding only (review #9)

    hi = lax.Precision.HIGHEST
    x_bcn = x_nchw.reshape(B, C, N).astype(jnp.float32)   # free reshape, channel-major

    # Hoisted 1x1-conv QKV projection (tiny fraction of the attention FLOPs): keeps the
    # kernel grid fully parallel and drops the per-batch projection scratch from VMEM.
    q = jax.nn.relu(jnp.einsum("dc,bcn->bdn", wq, x_bcn, precision=hi) + bq[None, :, None])
    k = jax.nn.relu(jnp.einsum("dc,bcn->bdn", wk, x_bcn, precision=hi) + bk[None, :, None])
    v = jax.nn.relu(jnp.einsum("dc,bcn->bdn", wv, x_bcn, precision=hi) + bv[None, :, None])

    gamma_f = jnp.asarray(gamma, jnp.float32).reshape(())
    pad = cq_pad - Cq
    # Zero-pad q/k channels (pad rows contribute exactly 0 energy after ReLU), fold gamma
    # into V, and cast the MXU operands to the compute dtype (bf16 by default).
    q = jnp.pad(q, ((0, 0), (0, pad), (0, 0))).astype(compute_dtype)
    k = jnp.pad(k, ((0, 0), (0, pad), (0, 0))).astype(compute_dtype)
    v = (gamma_f * v).astype(compute_dtype)

    cbytes = jnp.dtype(compute_dtype).itemsize
    abytes = jnp.dtype(attn_dtype).itemsize if output_attention else 0
    budget = (_physical_vmem_bytes() * 3) // 4            # explicit limit with headroom
    tq = _pick_query_tile(N, C, cq_pad, abytes, cbytes, budget)
    n_qt = N // tq

    kernel = functools.partial(_self_attn_kernel, write_attn=output_attention)

    in_specs = [
        pl.BlockSpec((1, cq_pad, tq), lambda b, qi: (b, 0, qi)),   # q tile
        pl.BlockSpec((1, cq_pad, N), lambda b, qi: (b, 0, 0)),     # k (full row per batch)
        pl.BlockSpec((1, C, N), lambda b, qi: (b, 0, 0)),          # gamma * v (full row)
        pl.BlockSpec((1, C, tq), lambda b, qi: (b, 0, qi)),        # x residual tile
    ]
    out_spec = pl.BlockSpec((1, C, tq), lambda b, qi: (b, 0, qi))
    if output_attention:
        out_shape = (jax.ShapeDtypeStruct((B, C, N), jnp.float32),
                     jax.ShapeDtypeStruct((B, N, N), attn_dtype))
        out_specs = (out_spec, pl.BlockSpec((1, tq, N), lambda b, qi: (b, qi, 0)))
    else:
        out_shape = jax.ShapeDtypeStruct((B, C, N), jnp.float32)
        out_specs = out_spec

    flops = 2 * B * N * N * (cq_pad + C)
    bytes_accessed = (cbytes * B * N * (2 * cq_pad + C)    # q, k, v reads
                      + 4 * B * C * N * 2                  # x read + out write
                      + abytes * B * N * N)                # attention writeback

    result = pl.pallas_call(
        kernel,
        out_shape=out_shape,
        grid=(B, n_qt),
        in_specs=in_specs,
        out_specs=out_specs,
        compiler_params=pltpu.CompilerParams(
            dimension_semantics=("parallel", "parallel"),  # no cross-tile state: megacore OK
            vmem_limit_bytes=int(budget)),
        cost_estimate=pl.CostEstimate(flops=flops, transcendentals=B * N * N,
                                      bytes_accessed=bytes_accessed),
    )(q, k, v, x_bcn)

    if output_attention:
        out_bcn, attn = result
        return out_bcn.reshape(B, C, W, H), attn
    return result.reshape(B, C, W, H)


def _reference(x_nchw, wq, bq, wk, bk, wv, bv, gamma):
    """Pure-JAX f32 reference mirroring the PyTorch forward (activation = ReLU)."""
    B, C, W, H = x_nchw.shape
    N = W * H
    hi = lax.Precision.HIGHEST
    x = x_nchw.reshape(B, C, N).astype(jnp.float32)
    q = jax.nn.relu(jnp.einsum("dc,bcn->bdn", wq, x, precision=hi) + bq[None, :, None])
    k = jax.nn.relu(jnp.einsum("dc,bcn->bdn", wk, x, precision=hi) + bk[None, :, None])
    v = jax.nn.relu(jnp.einsum("dc,bcn->bdn", wv, x, precision=hi) + bv[None, :, None])
    energy = jnp.einsum("bdi,bdj->bij", q, k, precision=hi)          # (B, N, N)
    attn = jax.nn.softmax(energy, axis=-1)
    out = jnp.einsum("bcj,bij->bci", v, attn, precision=hi)          # (B, C, N)
    return (gamma * out + x).reshape(B, C, W, H), attn


if __name__ == "__main__":
    B, C, W, H = 2, 16, 16, 16          # in_dim = 16 -> query/key channels = 16 // 8 = 2
    Cq = C // 8

    key = jax.random.PRNGKey(0)
    kx, k1, k2, k3, k4, k5, k6 = jax.random.split(key, 7)
    x = jax.random.normal(kx, (B, C, W, H), dtype=jnp.float32)

    # 1x1 conv weights in (C_out, C_in) order, matching nn.Conv2d weight layout.
    scale = 1.0 / np.sqrt(C)
    wq = jax.random.normal(k1, (Cq, C), dtype=jnp.float32) * scale
    bq = jax.random.normal(k2, (Cq,), dtype=jnp.float32) * scale
    wk = jax.random.normal(k3, (Cq, C), dtype=jnp.float32) * scale
    bk = jax.random.normal(k4, (Cq,), dtype=jnp.float32) * scale
    wv = jax.random.normal(k5, (C, C), dtype=jnp.float32) * scale
    bv = jax.random.normal(k6, (C,), dtype=jnp.float32) * scale
    # The module initializes gamma to zero; use a nonzero value so the attention path
    # actually contributes to `out` in the numerical check.
    gamma = jnp.asarray(0.5, dtype=jnp.float32)

    ref_out, ref_attn = _reference(x, wq, bq, wk, bk, wv, bv, gamma)

    # 1) Exact path: f32 MXU operands -> tight check against the f32 reference.
    out32, attn32 = self_attn_pallas(x, wq, bq, wk, bk, wv, bv, gamma,
                                     compute_dtype=jnp.float32)
    jax.block_until_ready((out32, attn32))
    np.testing.assert_allclose(np.asarray(attn32), np.asarray(ref_attn),
                               rtol=2e-3, atol=1e-4)
    np.testing.assert_allclose(np.asarray(out32), np.asarray(ref_out),
                               rtol=2e-3, atol=1e-3)

    # 2) Default fast path: bf16 MXU operands, f32 accumulation -> loose check
    #    (bf16 rounding of q/k passes through exp()).
    out_bf, attn_bf = self_attn_pallas(x, wq, bq, wk, bk, wv, bv, gamma)
    jax.block_until_ready((out_bf, attn_bf))
    np.testing.assert_allclose(np.asarray(attn_bf), np.asarray(ref_attn),
                               rtol=1e-1, atol=2e-2)
    np.testing.assert_allclose(np.asarray(out_bf), np.asarray(ref_out),
                               rtol=1e-1, atol=5e-2)

    # 3) Activation-only path: no B*N^2 attention writeback at all.
    out_only = self_attn_pallas(x, wq, bq, wk, bk, wv, bv, gamma,
                                output_attention=False)
    jax.block_until_ready(out_only)
    np.testing.assert_allclose(np.asarray(out_only), np.asarray(ref_out),
                               rtol=1e-1, atol=5e-2)

    print("KERNEL_OK")
</pallas_src>

<mosaic_0001>
module attributes {stable_mosaic.version = 11 : i64} {
  func.func @_self_attn_kernel(%arg0: i32, %arg1: i32, %arg2: memref<1x8x256xf32, #tpu.memory_space<vmem>>, %arg3: memref<1x8x256xf32, #tpu.memory_space<vmem>>, %arg4: memref<1x16x256xf32, #tpu.memory_space<vmem>>, %arg5: memref<1x16x256xf32, #tpu.memory_space<vmem>>, %arg6: memref<1x16x256xf32, #tpu.memory_space<vmem>>, %arg7: memref<1x256x256xf32, #tpu.memory_space<vmem>>) attributes {dimension_semantics = [#tpu.dimension_semantics<parallel>, #tpu.dimension_semantics<parallel>], iteration_bounds = array<i64: 2, 1>, scalar_prefetch = 0 : i64, scratch_operands = 0 : i64, tpu.core_type = #tpu.core_type<tc>, window_params = [{transform_indices = @transform_0, window_bounds = array<i64: 1, 8, 256>}, {transform_indices = @transform_1, window_bounds = array<i64: 1, 8, 256>}, {transform_indices = @transform_2, window_bounds = array<i64: 1, 16, 256>}, {transform_indices = @transform_3, window_bounds = array<i64: 1, 16, 256>}, {transform_indices = @transform_4, window_bounds = array<i64: 1, 16, 256>}, {transform_indices = @transform_5, window_bounds = array<i64: 1, 256, 256>}]} {
    %c0 = arith.constant 0 : index
    %c0_0 = arith.constant 0 : index
    %c0_1 = arith.constant 0 : index
    %0 = vector.load %arg2[%c0, %c0_0, %c0_1] : memref<1x8x256xf32, #tpu.memory_space<vmem>>, vector<1x8x256xf32>
    %1 = vector.shape_cast %0 : vector<1x8x256xf32> to vector<8x256xf32>
    %c0_2 = arith.constant 0 : index
    %c0_3 = arith.constant 0 : index
    %c0_4 = arith.constant 0 : index
    %2 = vector.load %arg3[%c0_2, %c0_3, %c0_4] : memref<1x8x256xf32, #tpu.memory_space<vmem>>, vector<1x8x256xf32>
    %3 = vector.shape_cast %2 : vector<1x8x256xf32> to vector<8x256xf32>
    %c0_5 = arith.constant 0 : index
    %c0_6 = arith.constant 0 : index
    %c0_7 = arith.constant 0 : index
    %4 = vector.load %arg4[%c0_5, %c0_6, %c0_7] : memref<1x16x256xf32, #tpu.memory_space<vmem>>, vector<1x16x256xf32>
    %5 = vector.shape_cast %4 : vector<1x16x256xf32> to vector<16x256xf32>
    %cst = arith.constant dense<0.000000e+00> : vector<256x256xf32>
    %6 = tpu.matmul %1, %3, %cst {dimension_numbers = #tpu.dot_dimension_numbers<[0], [0], [1], [1], [0, 1, 1, 1], [], []>} : vector<8x256xf32>, vector<8x256xf32>, vector<256x256xf32> -> vector<256x256xf32>
    %cst_8 = arith.constant dense<0xFF800000> : vector<256xf32>
    %7 = vector.multi_reduction <maximumf>, %6, %cst_8 [1] : vector<256x256xf32> to vector<256xf32>
    %8 = vector.shape_cast %7 : vector<256xf32> to vector<256x1xf32>
    %9 = vector.broadcast %8 : vector<256x1xf32> to vector<256x256xf32>
    %10 = arith.subf %6, %9 : vector<256x256xf32>
    %11 = math.exp %10 : vector<256x256xf32>
    %cst_9 = arith.constant dense<0.000000e+00> : vector<256xf32>
    %12 = vector.multi_reduction <add>, %11, %cst_9 [1] : vector<256x256xf32> to vector<256xf32>
    %13 = vector.shape_cast %12 : vector<256xf32> to vector<256x1xf32>
    %cst_10 = arith.constant 1.000000e+00 : f32
    %14 = vector.broadcast %cst_10 : f32 to vector<256x1xf32>
    %15 = arith.divf %14, %13 : vector<256x1xf32>
    %16 = vector.broadcast %15 : vector<256x1xf32> to vector<256x256xf32>
    %17 = arith.mulf %11, %16 : vector<256x256xf32>
    %cst_11 = arith.constant dense<0.000000e+00> : vector<16x256xf32>
    %18 = tpu.matmul %5, %17, %cst_11 {dimension_numbers = #tpu.dot_dimension_numbers<[1], [1], [0], [0], [0, 0, 1, 0], [], []>} : vector<16x256xf32>, vector<256x256xf32>, vector<16x256xf32> -> vector<16x256xf32>
    %c0_12 = arith.constant 0 : index
    %c0_13 = arith.constant 0 : index
    %c0_14 = arith.constant 0 : index
    %19 = vector.load %arg5[%c0_12, %c0_13, %c0_14] : memref<1x16x256xf32, #tpu.memory_space<vmem>>, vector<1x16x256xf32>
    %20 = vector.shape_cast %19 : vector<1x16x256xf32> to vector<16x256xf32>
    %21 = arith.addf %18, %20 : vector<16x256xf32>
    %c0_15 = arith.constant 0 : index
    %c0_16 = arith.constant 0 : index
    %c0_17 = arith.constant 0 : index
    %22 = vector.load %arg6[%c0_15, %c0_16, %c0_17] : memref<1x16x256xf32, #tpu.memory_space<vmem>>, vector<1x16x256xf32>
    %23 = vector.shape_cast %22 : vector<1x16x256xf32> to vector<16x256xf32>
    %24 = vector.shape_cast %21 : vector<16x256xf32> to vector<1x16x256xf32>
    tpu.vector_store %arg6[%c0_15, %c0_16, %c0_17], %24 {strides = array<i32>} : memref<1x16x256xf32, #tpu.memory_space<vmem>>, vector<1x16x256xf32>,
    %c0_18 = arith.constant 0 : index
    %c0_19 = arith.constant 0 : index
    %c0_20 = arith.constant 0 : index
    %25 = vector.load %arg7[%c0_18, %c0_19, %c0_20] : memref<1x256x256xf32, #tpu.memory_space<vmem>>, vector<1x256x256xf32>
    %26 = vector.shape_cast %25 : vector<1x256x256xf32> to vector<256x256xf32>
    %27 = vector.shape_cast %17 : vector<256x256xf32> to vector<1x256x256xf32>
    tpu.vector_store %arg7[%c0_18, %c0_19, %c0_20], %27 {strides = array<i32>} : memref<1x256x256xf32, #tpu.memory_space<vmem>>, vector<1x256x256xf32>,
    return
  }
  func.func @transform_0(%arg0: i32, %arg1: i32) -> (i32, i32, i32) {
    %c0_i32 = arith.constant 0 : i32
    %c0_i32_0 = arith.constant 0 : i32
    return %arg0, %c0_i32, %arg1 : i32, i32, i32
  }
  func.func @transform_1(%arg0: i32, %arg1: i32) -> (i32, i32, i32) {
    %c0_i32 = arith.constant 0 : i32
    %c0_i32_0 = arith.constant 0 : i32
    %c0_i32_1 = arith.constant 0 : i32
    return %arg0, %c0_i32, %c0_i32_0 : i32, i32, i32
  }
  func.func @transform_2(%arg0: i32, %arg1: i32) -> (i32, i32, i32) {
    %c0_i32 = arith.constant 0 : i32
    %c0_i32_0 = arith.constant 0 : i32
    %c0_i32_1 = arith.constant 0 : i32
    return %arg0, %c0_i32, %c0_i32_0 : i32, i32, i32
  }
  func.func @transform_3(%arg0: i32, %arg1: i32) -> (i32, i32, i32) {
    %c0_i32 = arith.constant 0 : i32
    %c0_i32_0 = arith.constant 0 : i32
    return %arg0, %c0_i32, %arg1 : i32, i32, i32
  }
  func.func @transform_4(%arg0: i32, %arg1: i32) -> (i32, i32, i32) {
    %c0_i32 = arith.constant 0 : i32
    %c0_i32_0 = arith.constant 0 : i32
    return %arg0, %c0_i32, %arg1 : i32, i32, i32
  }
  func.func @transform_5(%arg0: i32, %arg1: i32) -> (i32, i32, i32) {
    %c0_i32 = arith.constant 0 : i32
    %c0_i32_0 = arith.constant 0 : i32
    return %arg0, %arg1, %c0_i32 : i32, i32, i32
  }
}

</mosaic_0001>

<bundles_post_ra>
// kernel: self_attn_pallas.1
= control target key start
LH: loop header
LB: loop body
LE: loop exit
PB: predicated region body
PF: predicated region fallthrough
CT: control target
= control target key end

     0   :  { %11 = vsyncpa [#allocation3], 0  ;;  %s3032_s0 = inlined_call_operand.vmem [shape: f32[2,8,256], index: 0, kind: input, shape index: {}]   ;;  %s3033_s1 = inlined_call_operand.vmem [shape: f32[2,8,256], index: 1, kind: input, shape index: {}]   ;;  %s3034_s2 = inlined_call_operand.vmem [shape: f32[2,16,256], index: 2, kind: input, shape index: {}]   ;;  %s3035_s3 = inlined_call_operand.vmem [shape: f32[2,16,256], index: 3, kind: input, shape index: {}]   ;;  %s3036_s4 = inlined_call_operand.vmem [shape: f32[2,16,256], index: 4, kind: output, shape index: {0}]   ;;  %s3037_s5 = inlined_call_operand.hbm [shape: f32[2,256,256], index: 5, kind: output, shape index: {1}]  }
   0x1   :  { %13 = vsyncpa [#allocation3 + $0x1], 0  ;;  %s2114_s18 = smov 0   ;;  %s2116_s19 = smov 0  }
   0x2   :  { %s2118_s20 = smov 0   ;;  %s2120_s21 = smov 0  }
   0x3   :  { %s2122_s22 = smov 0   ;;  %s2124_s23 = smov 0  }
   0x4 LB: > { %s1629_s24 = sadd.s32 4294967295, %s2078_s23   ;;  %s1630_s25 = sadd.s32 4294967294, %s2078_s23   ;;  %s2078_s23 = sphi %s2124_s23, %s19_s23   ;;  %s2074_s22 = sphi %s2122_s22, %s3131_s22   ;;  %s2070_s21 = sphi %s2120_s21, %s3130_s21   ;;  %s2066_s20 = sphi %s2118_s20, %s3129_s20   ;;  %s2062_s19 = sphi %s2116_s19, %s3128_s19   ;;  %s2058_s18 = sphi %s2114_s18, %s3127_s18  }
   0x5   : > { %s31_s26 = sadd.s32 1, %s2074_s22  ;;  %s176_s27 = sadd.s32 1, %s2066_s20 }
   0x6   : > { %p33_p0 = scmp.ge.s32.totalorder %s31_s26, 2  ;;  %p186_p1 = scmp.ne.s32.totalorder %s2066_s20, %s2062_s19 }
   0x7   : > { %p187_p2 = scmp.eq.s32.totalorder %s1629_s24, 1  ;;  %p192_p3 = scmp.ne.s32.totalorder %s2062_s19, %s2058_s18 }
   0x8   : > { %s3133_s26 = smov (%p33_p0, %s31_s26), 0  ;;  %p193_p5 = scmp.eq.s32.totalorder %s1630_s25, 1 }
   0x9   : > { %p2154_p4 = por %p187_p2, %p186_p1  ;;  %s171_s29 = ssub.s32 %s2074_s22, %s3133_s26 }
   0xa   : > { %p1633_p6 = scmp.ge.s32.totalorder %s2078_s23, 1  ;;  %p174_p7 = scmp.eq.s32.totalorder %s171_s29, 0 }
   0xb   : > { %p2161_p8 = por %p193_p5, %p192_p3  ;;  %p253_p9 = scmp.lt.s32.totalorder %s2078_s23, 3 }
   0xc   : > { %s2167_s6 = scalar_select %p174_p7, %s2066_s20, %s176_s27  }
   0xd   : > { %p254_p10 = pnand %p1633_p6, %p253_p9 }
   0xf   : > { %257 = sbr.rel (%p254_p10) target bundleno = 1115 (0x45b), region = 36 }
  0x14   : > { %p314_p11 = scmp.lt.s32.totalorder %s2070_s21, 1  ;;  %v2080_v0 = vmov 0.0   ;;  %vm426_vm0 = vcmask 64512   ;;  %s310_s15 = sand.u32 1, %s2062_s19  }
  0x15   : > { %587 = vmatprep.mubr.f32.mxu0 %v2080_v0  ;;  %s1634_s16 = sshll.u32 %s310_s15, 9  ;;  %s2979_s12 = scalar_lea.sflag [#allocation3], %s310_s15 }
  0x16   : > { %s2172_s7 = scalar_select %p314_p11, %s2070_s21, 1 }
  0x17   : > { %s2709_s17 = scalar_lea.vmem [#allocation2], %s1634_s16 }
  0x18   : > { %s1682_s8 = sshll.u32 %s2172_s7, 4  ;;  %s2851_s24 = sshll.u32 %s2172_s7, 5 }
  0x19   : > { %s321_s11 = scalar_lea.vmem %s3032_s0, %s1682_s8  ;;  %s327_s14 = scalar_lea.vmem %s3033_s1, %s1682_s8 }
  0x1a   : > { %v354_v1 = vld [vmem:[%s321_s11] sm:$0xff]  ;;  %v357_v2 = vld [vmem:[%s327_s14 + $0x8] sm:$0xff]  ;;  %s2866_s29 = scalar_lea.vmem %s3034_s2, %s2851_s24  ;;  %s1687_s7 = sshll.u32 %s2070_s21, 13 }
  0x1b   : > { %362 = vxpose.xlu0.b32.start.end [1/1] (short) %v354_v1, 128  ;;  %553 = vmatprep.subr.mxu0 %v357_v2  ;;  %v356_v3 = vld [vmem:[%s327_s14] sm:$0xff]  ;;  %v355_v4 = vld [vmem:[%s321_s11 + $0x8] sm:$0xff]  ;;  %s1471_s8 = sshll.u32 %s2709_s17, 4  ;;  %s2973_s11 = scalar_lea.hbm %s3037_s5, %s1687_s7  ;;  %s2975_s8 = int_to_ptr.vmem [resolvable:$true] %s1471_s8 }
  0x1c   : > { %554 = vmatpush1.msra.mxu0 %v356_v3  ;;  %s2002_s13 = scalar_lea.vmem %s2975_s8, 8192  ;;  %s2081_s21 = smov [#allocation2]  }
  0x1d   : > { %p2003_p12 = scmp.ne.s32.totalorder %s2975_s8, %s2002_s13  ;;  %s2006_s14 = sshll.u32 %s2081_s21, 4  ;;  %s2007_s14 = int_to_ptr.vmem [resolvable:$false] %s2006_s14 }
  0x1e   : > { %s2008_s16 = scalar_lea.vmem %s2007_s14, 16384  ;;  %p2009_p1 = scmp.lt.s32.totalorder %s2975_s8, %s2007_s14 }
  0x1f   : > { %p2004_p13 = pnand %p2003_p12, %p2154_p4  ;;  %p2010_p2 = scmp.lt.s32.totalorder %s2008_s16, %s2002_s13 }
  0x21   : > { %p2005_p0 = pneg %p2004_p13  ;;  %p2011_p3 = por %p2010_p2, %p2009_p1 }
  0x23   : > { %p2012_p5 = pnand %p2011_p3, %p2005_p0 }
  0x58   : > { %394 = vxpose.xlu0.b32.start.end [1/1] (short) %v355_v4, 128 }
  0x97   : > { %v378_v5 = vpop.trf.xlu0 }
  0x98   : > { %1645 = vmatmul.mubr.msk.f32.vlgmr.msra.gmra.mxu0 %vm426_vm0, %v378_v5 }
  0x99   : > { %593 = vmatprep.mubr.f32.mxu0 %v2080_v0 }
  0x9b   : > { %v379_v6 = vpop.trf.xlu0 }
  0x9c   : > { %1646 = vmatmul.mubr.msk.f32.gmra.mxu0 %vm426_vm0, %v379_v6 }
  0x9d   : > { %599 = vmatprep.mubr.f32.mxu0 %v2080_v0 }
  0x9f   : > { %v380_v7 = vpop.trf.xlu0 }
  0xa0   : > { %1647 = vmatmul.mubr.msk.f32.gmra.mxu0 %vm426_vm0, %v380_v7 }
  0xa1   : > { %605 = vmatprep.mubr.f32.mxu0 %v2080_v0 }
  0xa3   : > { %v381_v8 = vpop.trf.xlu0 }
  0xa4   : > { %1648 = vmatmul.mubr.msk.f32.gmra.mxu0 %vm426_vm0, %v381_v8 }
  0xa5   : > { %611 = vmatprep.mubr.f32.mxu0 %v2080_v0 }
  0xa7   : > { %v382_v9 = vpop.trf.xlu0 }
  0xa8   : > { %1649 = vmatmul.mubr.msk.f32.gmra.mxu0 %vm426_vm0, %v382_v9 }
  0xa9   : > { %617 = vmatprep.mubr.f32.mxu0 %v2080_v0 }
  0xab   : > { %v383_v10 = vpop.trf.xlu0 }
  0xac   : > { %1650 = vmatmul.mubr.msk.f32.gmra.mxu0 %vm426_vm0, %v383_v10 }
  0xad   : > { %623 = vmatprep.mubr.f32.mxu0 %v2080_v0 }
  0xaf   : > { %v384_v11 = vpop.trf.xlu0 }
  0xb0   : > { %1651 = vmatmul.mubr.msk.f32.gmra.mxu0 %vm426_vm0, %v384_v11 }
  0xb1   : > { %629 = vmatprep.mubr.f32.mxu0 %v2080_v0 }
  0xb3   : > { %v385_v12 = vpop.trf.xlu0 }
  0xb4   : > { %1652 = vmatmul.mubr.msk.f32.gmra.mxu0 %vm426_vm0, %v385_v12 }
  0xb5   : > { %635 = vmatprep.mubr.f32.mxu0 %v2080_v0 }
  0xb7   : > { %v386_v13 = vpop.trf.xlu0 }
  0xb8   : > { %1653 = vmatmul.mubr.msk.f32.gmra.mxu0 %vm426_vm0, %v386_v13 }
  0xb9   : > { %641 = vmatprep.mubr.f32.mxu0 %v2080_v0 }
  0xbb   : > { %v387_v14 = vpop.trf.xlu0 }
  0xbc   : > { %1654 = vmatmul.mubr.msk.f32.gmra.mxu0 %vm426_vm0, %v387_v14 }
  0xbd   : > { %647 = vmatprep.mubr.f32.mxu0 %v2080_v0 }
  0xbf   : > { %v388_v15 = vpop.trf.xlu0 }
  0xc0   : > { %1655 = vmatmul.mubr.msk.f32.gmra.mxu0 %vm426_vm0, %v388_v15 }
  0xc1   : > { %653 = vmatprep.mubr.f32.mxu0 %v2080_v0 }
  0xc3   : > { %v389_v16 = vpop.trf.xlu0 }
  0xc4   : > { %1656 = vmatmul.mubr.msk.f32.gmra.mxu0 %vm426_vm0, %v389_v16 }
  0xc5   : > { %659 = vmatprep.mubr.f32.mxu0 %v2080_v0 }
  0xc7   : > { %v390_v17 = vpop.trf.xlu0 }
  0xc8   : > { %1657 = vmatmul.mubr.msk.f32.gmra.mxu0 %vm426_vm0, %v390_v17 }
  0xc9   : > { %665 = vmatprep.mubr.f32.mxu0 %v2080_v0 }
  0xcb   : > { %v391_v18 = vpop.trf.xlu0 }
  0xcc   : > { %1658 = vmatmul.mubr.msk.f32.gmra.mxu0 %vm426_vm0, %v391_v18 }
  0xcd   : > { %671 = vmatprep.mubr.f32.mxu0 %v2080_v0 }
  0xcf   : > { %v392_v19 = vpop.trf.xlu0 }
  0xd0   : > { %1659 = vmatmul.mubr.msk.f32.gmra.mxu0 %vm426_vm0, %v392_v19 }
  0xd1   : > { %677 = vmatprep.mubr.f32.mxu0 %v2080_v0 }
  0xd3   : > { %v393_v20 = vpop.trf.xlu0 }
  0xd4   : > { %1660 = vmatmul.mubr.msk.f32.gmra.mxu0 %vm426_vm0, %v393_v20 }
  0xd5   : > { %683 = vmatprep.mubr.f32.mxu0 %v2080_v0 }
  0xd7   : > { %v410_v21 = vpop.trf.xlu0 }
  0xd8   : > { %1661 = vmatmul.mubr.msk.f32.gmra.mxu0 %vm426_vm0, %v410_v21 }
  0xd9   : > { %689 = vmatprep.mubr.f32.mxu0 %v2080_v0 }
  0xdb   : > { %v411_v22 = vpop.trf.xlu0 }
  0xdc   : > { %1662 = vmatmul.mubr.msk.f32.gmra.mxu0 %vm426_vm0, %v411_v22 }
  0xdd   : > { %695 = vmatprep.mubr.f32.mxu0 %v2080_v0 }
  0xdf   : > { %v412_v23 = vpop.trf.xlu0 }
  0xe0   : > { %1663 = vmatmul.mubr.msk.f32.gmra.mxu0 %vm426_vm0, %v412_v23 }
  0xe1   : > { %701 = vmatprep.mubr.f32.mxu0 %v2080_v0 }
  0xe3   : > { %v413_v24 = vpop.trf.xlu0 }
  0xe4   : > { %1664 = vmatmul.mubr.msk.f32.gmra.mxu0 %vm426_vm0, %v413_v24 }
  0xe5   : > { %707 = vmatprep.mubr.f32.mxu0 %v2080_v0 }
  0xe7   : > { %v414_v25 = vpop.trf.xlu0 }
  0xe8   : > { %1665 = vmatmul.mubr.msk.f32.gmra.mxu0 %vm426_vm0, %v414_v25 }
  0xe9   : > { %713 = vmatprep.mubr.f32.mxu0 %v2080_v0 }
  0xeb   : > { %v415_v26 = vpop.trf.xlu0 }
  0xec   : > { %1666 = vmatmul.mubr.msk.f32.gmra.mxu0 %vm426_vm0, %v415_v26 }
  0xed   : > { %719 = vmatprep.mubr.f32.mxu0 %v2080_v0 }
  0xef   : > { %v416_v27 = vpop.trf.xlu0 }
  0xf0   : > { %1667 = vmatmul.mubr.msk.f32.gmra.mxu0 %vm426_vm0, %v416_v27 }
  0xf1   : > { %725 = vmatprep.mubr.f32.mxu0 %v2080_v0 }
  0xf3   : > { %v417_v28 = vpop.trf.xlu0 }
  0xf4   : > { %1668 = vmatmul.mubr.msk.f32.gmra.mxu0 %vm426_vm0, %v417_v28 }
  0xf5   : > { %731 = vmatprep.mubr.f32.mxu0 %v2080_v0 }
  0xf7   : > { %v418_v29 = vpop.trf.xlu0 }
  0xf8   : > { %1669 = vmatmul.mubr.msk.f32.gmra.mxu0 %vm426_vm0, %v418_v29 }
  0xf9   : > { %737 = vmatprep.mubr.f32.mxu0 %v2080_v0 }
  0xfb   : > { %v419_v30 = vpop.trf.xlu0 }
  0xfc   : > { %1670 = vmatmul.mubr.msk.f32.gmra.mxu0 %vm426_vm0, %v419_v30 }
  0xfd   : > { %743 = vmatprep.mubr.f32.mxu0 %v2080_v0 }
  0xff   : > { %v420_v31 = vpop.trf.xlu0 }
 0x100   : > { %1671 = vmatmul.mubr.msk.f32.gmra.mxu0 %vm426_vm0, %v420_v31 }
 0x101   : > { %749 = vmatprep.mubr.f32.mxu0 %v2080_v0 }
 0x103   : > { %v421_v32 = vpop.trf.xlu0 }
 0x104   : > { %1672 = vmatmul.mubr.msk.f32.gmra.mxu0 %vm426_vm0, %v421_v32 }
 0x105   : > { %755 = vmatprep.mubr.f32.mxu0 %v2080_v0 }
 0x107   : > { %v422_v33 = vpop.trf.xlu0 }
 0x108   : > { %1673 = vmatmul.mubr.msk.f32.gmra.mxu0 %vm426_vm0, %v422_v33 }
 0x109   : > { %761 = vmatprep.mubr.f32.mxu0 %v2080_v0 }
 0x10b   : > { %v423_v34 = vpop.trf.xlu0 }
 0x10c   : > { %1674 = vmatmul.mubr.msk.f32.gmra.mxu0 %vm426_vm0, %v423_v34 }
 0x10d   : > { %767 = vmatprep.mubr.f32.mxu0 %v2080_v0 }
 0x10f   : > { %v424_v35 = vpop.trf.xlu0 }
 0x110   : > { %1675 = vmatmul.mubr.msk.f32.gmra.mxu0 %vm426_vm0, %v424_v35 }
 0x111   : > { %773 = vmatprep.mubr.f32.mxu0 %v2080_v0 }
 0x113   : > { %v425_v36 = vpop.trf.xlu0 }
 0x114   : > { %1676 = vmatmul.mubr.msk.f32.gmra.mxu0 %vm426_vm0, %v425_v36 }
 0x158   : > { %v2244_v37 = vpop.f32.mrf.mxu0 }
 0x15a   : > { %v2246_v38 = vpop.f32.mrf.mxu0 }
 0x15b   : > { %v780_v34 = vmax.f32 %v2244_v37, %v2246_v38 }
 0x15c   : > { %v2248_v39 = vpop.f32.mrf.mxu0 }
 0x15e   : > { %v2250_v40 = vpop.f32.mrf.mxu0 }
 0x15f   : > { %v783_v31 = vmax.f32 %v2248_v39, %v2250_v40 }
 0x160   : > { %v2252_v41 = vpop.f32.mrf.mxu0 }
 0x162   : > { %v2254_v42 = vpop.f32.mrf.mxu0 }
 0x163   : > { %v786_v28 = vmax.f32 %v2252_v41, %v2254_v42 }
 0x164   : > { %v2256_v43 = vpop.f32.mrf.mxu0 }
 0x166   : > { %v2258_v44 = vpop.f32.mrf.mxu0 }
 0x167   : > { %v789_v25 = vmax.f32 %v2256_v43, %v2258_v44 }
 0x168   : > { %v2260_v45 = vpop.f32.mrf.mxu0 }
 0x16a   : > { %v2262_v46 = vpop.f32.mrf.mxu0 }
 0x16b   : > { %v792_v22 = vmax.f32 %v2260_v45, %v2262_v46 }
 0x16c   : > { %v2264_v47 = vpop.f32.mrf.mxu0 }
 0x16e   : > { %v2266_v48 = vpop.f32.mrf.mxu0 }
 0x16f   : > { %v795_v19 = vmax.f32 %v2264_v47, %v2266_v48 }
 0x170   : > { %v2268_v49 = vpop.f32.mrf.mxu0 }
 0x172   : > { %v2270_v50 = vpop.f32.mrf.mxu0 }
 0x173   : > { %v798_v16 = vmax.f32 %v2268_v49, %v2270_v50 }
 0x174   : > { %v2272_v51 = vpop.f32.mrf.mxu0 }
 0x176   : > { %v2274_v52 = vpop.f32.mrf.mxu0 }
 0x177   : > { %v801_v53 = vmax.f32 %v2272_v51, %v2274_v52 }
 0x178   : > { %v2278_v54 = vpop.f32.mrf.mxu0 }
 0x179   : > { %802 = vmax.xlane.f32.xlu1 %v801_v53 }
 0x17a   : > { %v2280_v55 = vpop.f32.mrf.mxu0 }
 0x17b   : > { %v804_v56 = vmax.f32 %v2278_v54, %v2280_v55 }
 0x17c   : > { %v2284_v57 = vpop.f32.mrf.mxu0 }
 0x17d   : > { %805 = vmax.xlane.f32.xlu1 %v804_v56 }
 0x17e   : > { %v2286_v58 = vpop.f32.mrf.mxu0 }
 0x17f   : > { %v807_v59 = vmax.f32 %v2284_v57, %v2286_v58 }
 0x180   : > { %v2290_v60 = vpop.f32.mrf.mxu0 }
 0x181   : > { %808 = vmax.xlane.f32.xlu1 %v807_v59 }
 0x182   : > { %v2292_v61 = vpop.f32.mrf.mxu0 }
 0x183   : > { %v810_v62 = vmax.f32 %v2290_v60, %v2292_v61 }
 0x184   : > { %v2296_v63 = vpop.f32.mrf.mxu0 }
 0x185   : > { %811 = vmax.xlane.f32.xlu1 %v810_v62 }
 0x186   : > { %v2298_v0 = vpop.f32.mrf.mxu0 }
 0x187   : > { %v813_v1 = vmax.f32 %v2296_v63, %v2298_v0 }
 0x188   : > { %v2302_v2 = vpop.f32.mrf.mxu0 }
 0x189   : > { %814 = vmax.xlane.f32.xlu1 %v813_v1 }
 0x18a   : > { %v2304_v3 = vpop.f32.mrf.mxu0 }
 0x18b   : > { %v816_v4 = vmax.f32 %v2302_v2, %v2304_v3 }
 0x18c   : > { %v2308_v5 = vpop.f32.mrf.mxu0 }
 0x18d   : > { %817 = vmax.xlane.f32.xlu1 %v816_v4 }
 0x18e   : > { %v2310_v6 = vpop.f32.mrf.mxu0 }
 0x18f   : > { %v819_v7 = vmax.f32 %v2308_v5, %v2310_v6 }
 0x190   : > { %v2314_v8 = vpop.f32.mrf.mxu0 }
 0x191   : > { %820 = vmax.xlane.f32.xlu1 %v819_v7 }
 0x192   : > { %v2316_v9 = vpop.f32.mrf.mxu0 }
 0x193   : > { %v822_v10 = vmax.f32 %v2314_v8, %v2316_v9 }
 0x194   : > { %v2320_v11 = vpop.f32.mrf.mxu0 }
 0x195   : > { %823 = vmax.xlane.f32.xlu1 %v822_v10 }
 0x196   : > { %v2322_v12 = vpop.f32.mrf.mxu0 }
 0x197   : > { %v825_v13 = vmax.f32 %v2320_v11, %v2322_v12 }
 0x198   : > { %v2326_v14 = vpop.f32.mrf.mxu0 }
 0x199   : > { %3069 = vst [vmem:[#allocation5_spill] sm:$0xff] %v2326_v14  ;;  %826 = vmax.xlane.f32.xlu1 %v825_v13 }
 0x19a   : > { %v2328_v15 = vpop.f32.mrf.mxu0 }
 0x19b   : > { %3070 = vst [vmem:[#allocation6_spill] sm:$0xff] %v2328_v15 }
 0x19c   : > { %v2332_v17 = vpop.f32.mrf.mxu0 }
 0x19d   : > { %799 = vmax.xlane.f32.xlu1 %v798_v16 }
 0x19e   : > { %v2334_v18 = vpop.f32.mrf.mxu0 }
 0x1a0   : > { %v2338_v20 = vpop.f32.mrf.mxu0 }
 0x1a1   : > { %796 = vmax.xlane.f32.xlu1 %v795_v19 }
 0x1a2   : > { %v2340_v21 = vpop.f32.mrf.mxu0 }
 0x1a4   : > { %v2344_v23 = vpop.f32.mrf.mxu0 }
 0x1a5   : > { %793 = vmax.xlane.f32.xlu1 %v792_v22 }
 0x1a6   : > { %v2346_v24 = vpop.f32.mrf.mxu0 }
 0x1a8   : > { %v2350_v26 = vpop.f32.mrf.mxu0 }
 0x1a9   : > { %3071 = vst [vmem:[#allocation7_spill] sm:$0xff] %v2350_v26  ;;  %790 = vmax.xlane.f32.xlu1 %v789_v25 }
 0x1aa   : > { %v2352_v27 = vpop.f32.mrf.mxu0 }
 0x1ab   : > { %3072 = vst [vmem:[#allocation8_spill] sm:$0xff] %v2352_v27 }
 0x1ac   : > { %v2356_v29 = vpop.f32.mrf.mxu0 }
 0x1ad   : > { %3073 = vst [vmem:[#allocation9_spill] sm:$0xff] %v2356_v29  ;;  %787 = vmax.xlane.f32.xlu1 %v786_v28 }
 0x1ae   : > { %v2358_v30 = vpop.f32.mrf.mxu0 }
 0x1af   : > { %3074 = vst [vmem:[#allocation10_spill] sm:$0xff] %v2358_v30 }
 0x1b0   : > { %v2362_v32 = vpop.f32.mrf.mxu0 }
 0x1b1   : > { %784 = vmax.xlane.f32.xlu1 %v783_v31 }
 0x1b2   : > { %v2364_v33 = vpop.f32.mrf.mxu0 }
 0x1b4   : > { %v2368_v35 = vpop.f32.mrf.mxu0 }
 0x1b5   : > { %3075 = vst [vmem:[#allocation11_spill] sm:$0xff] %v2368_v35  ;;  %781 = vmax.xlane.f32.xlu1 %v780_v34 }
 0x1b6   : > { %v2370_v36 = vpop.f32.mrf.mxu0 }
 0x1b7   : > { %3076 = vst [vmem:[#allocation12_spill] sm:$0xff] %v2370_v36 }
 0x1b8   : > { %v2372_v53 = vpop.f32.mrf.mxu0 }
 0x1ba   : > { %v2374_v56 = vpop.f32.mrf.mxu0 }
 0x1bc   : > { %v2376_v59 = vpop.f32.mrf.mxu0 }
 0x1bd   : > { %3077 = vst [vmem:[#allocation13_spill] sm:$0xff] %v2376_v59 }
 0x1be   : > { %v2378_v62 = vpop.f32.mrf.mxu0 }
 0x1bf   : > { %3078 = vst [vmem:[#allocation14_spill] sm:$0xff] %v2378_v62 }
 0x1c0   : > { %v2380_v1 = vpop.f32.mrf.mxu0 }
 0x1c2   : > { %v2382_v4 = vpop.f32.mrf.mxu0 }
 0x1c4   : > { %v2384_v7 = vpop.f32.mrf.mxu0 }
 0x1c5   : > { %3079 = vst [vmem:[#allocation15_spill] sm:$0xff] %v2384_v7 }
 0x1c6   : > { %v2386_v10 = vpop.f32.mrf.mxu0 }
 0x1c7   : > { %3080 = vst [vmem:[#allocation16_spill] sm:$0xff] %v2386_v10  ;;  %v861_v15 = vmax.f32 %v2384_v7, %v2386_v10 }
 0x1c8   : > { %v2388_v13 = vpop.f32.mrf.mxu0 }
 0x1ca   : > { %v2390_v16 = vpop.f32.mrf.mxu0 }
 0x1cb   : > { %3081 = vst [vmem:[#allocation17_spill] sm:$0xff] %v2390_v16  ;;  %v864_v31 = vmax.f32 %v2388_v13, %v2390_v16 }
 0x1cc   : > { %v2392_v19 = vpop.f32.mrf.mxu0 }
 0x1cd   : > { %3082 = vst [vmem:[#allocation18_spill] sm:$0xff] %v2392_v19 }
 0x1ce   : > { %v2394_v22 = vpop.f32.mrf.mxu0 }
 0x1cf   : > { %3083 = vst [vmem:[#allocation19_spill] sm:$0xff] %v2394_v22  ;;  %v867_v25 = vmax.f32 %v2392_v19, %v2394_v22  ;;  %v858_v22 = vmax.f32 %v2380_v1, %v2382_v4  ;;  %v852_v19 = vmax.f32 %v2372_v53, %v2374_v56 }
 0x1d0   : > { %v2398_v28 = vpop.f32.mrf.mxu0 }
 0x1d1   : > { %868 = vmax.xlane.f32.xlu1 %v867_v25  ;;  %v855_v25 = vmax.f32 %v2376_v59, %v2378_v62 }
 0x1d2   : > { %v2402_v34 = vpop.f32.mrf.mxu0 }
 0x1d3   : > { %v870_v14 = vmax.f32 %v2398_v28, %v2402_v34 }
 0x1d4   : > { %v2414_v16 = vpop.f32.mrf.mxu0 }
 0x1d5   : > { %865 = vmax.xlane.f32.xlu1 %v864_v31  ;;  %871 = vmax.xlane.f32.xlu0 %v870_v14  ;;  %3084 = vst [vmem:[#allocation20_spill] sm:$0xff] %v2414_v16  ;;  %v849_v14 = vmax.f32 %v2368_v35, %v2370_v36 }
 0x1d6   : > { %v2418_v31 = vpop.f32.mrf.mxu0 }
 0x1d7   : > { %3085 = vst [vmem:[#allocation21_spill] sm:$0xff] %v2418_v31 }
 0x1d9   : > { %862 = vmax.xlane.f32.xlu1 %v861_v15  ;;  %v846_v15 = vmax.f32 %v2362_v32, %v2364_v33 }
 0x1dd   : > { %859 = vmax.xlane.f32.xlu1 %v858_v22  ;;  %v873_v22 = vmax.f32 %v2414_v16, %v2418_v31 }
 0x1e1   : > { %856 = vmax.xlane.f32.xlu1 %v855_v25  ;;  %v843_v25 = vmax.f32 %v2356_v29, %v2358_v30 }
 0x1e5   : > { %853 = vmax.xlane.f32.xlu1 %v852_v19  ;;  %v840_v19 = vmax.f32 %v2350_v26, %v2352_v27 }
 0x1e9   : > { %850 = vmax.xlane.f32.xlu1 %v849_v14 }
 0x1ed   : > { %847 = vmax.xlane.f32.xlu1 %v846_v15 }
 0x1f1   : > { %874 = vmax.xlane.f32.xlu1 %v873_v22 }
 0x1f5   : > { %844 = vmax.xlane.f32.xlu1 %v843_v25 }
 0x1f9   : > { %841 = vmax.xlane.f32.xlu1 %v840_v19 }
 0x202   : > { %v2428_v36 = vpop.xlane.xlu1 %802 }
 0x206   : > { %v2430_v14 = vpop.xlane.xlu1 %805 }
 0x20a   : > { %v809_v35 = vpop.xlane.xlu1 %808 }
 0x20e   : > { %v812_v62 = vpop.xlane.xlu1 %811 }
 0x212   : > { %v815_v59 = vpop.xlane.xlu1 %814 }
 0x213   : > { %v898_v15 = vsub.f32 %v2296_v63, %v815_v59  ;;  %v899_v10 = vsub.f32 %v2298_v0, %v815_v59 }
 0x215   : > { %v984_v22 = vmul.f32 1.442695, %v898_v15  ;;  %v986_v7 = vmul.f32 1.442695, %v899_v10 }
 0x216   : > { %v818_v31 = vpop.xlane.xlu1 %817 }
 0x217   : > { %1810 = vpow2.f32 %v984_v22  ;;  %v900_v25 = vsub.f32 %v2302_v2, %v818_v31  ;;  %v901_v30 = vsub.f32 %v2304_v3, %v818_v31  ;;  %v896_v3 = vsub.f32 %v2290_v60, %v812_v62 }
 0x218   : > { %1812 = vpow2.f32 %v986_v7  ;;  %v897_v31 = vsub.f32 %v2292_v61, %v812_v62  ;;  %v895_v22 = vsub.f32 %v2286_v58, %v809_v35 }
 0x219   : > { %v988_v19 = vmul.f32 1.442695, %v900_v25  ;;  %v990_v29 = vmul.f32 1.442695, %v901_v30 }
 0x21a   : > { %v821_v27 = vpop.xlane.xlu1 %820 }
 0x21b   : > { %1814 = vpow2.f32 %v988_v19  ;;  %v902_v26 = vsub.f32 %v2308_v5, %v821_v27  ;;  %v903_v16 = vsub.f32 %v2310_v6, %v821_v27 }
 0x21c   : > { %1816 = vpow2.f32 %v990_v29 }
 0x21d   : > { %v992_v63 = vmul.f32 1.442695, %v902_v26  ;;  %v994_v0 = vmul.f32 1.442695, %v903_v16  ;;  %v982_v16 = vmul.f32 1.442695, %v897_v31 }
 0x21e   : > { %v824_v59 = vpop.xlane.xlu1 %823 }
 0x21f   : > { %1818 = vpow2.f32 %v992_v63  ;;  %v904_v10 = vsub.f32 %v2314_v8, %v824_v59  ;;  %v905_v2 = vsub.f32 %v2316_v9, %v824_v59  ;;  %v980_v8 = vmul.f32 1.442695, %v896_v3 }
 0x220   : > { %1820 = vpow2.f32 %v994_v0 }
 0x221   : > { %v996_v7 = vmul.f32 1.442695, %v904_v10  ;;  %v998_v30 = vmul.f32 1.442695, %v905_v2  ;;  %v978_v10 = vmul.f32 1.442695, %v895_v22 }
 0x222   : > { %v827_v15 = vpop.xlane.xlu1 %826 }
 0x223   : > { %1822 = vpow2.f32 %v996_v7  ;;  %v906_v5 = vsub.f32 %v2320_v11, %v827_v15  ;;  %v907_v6 = vsub.f32 %v2322_v12, %v827_v15  ;;  %v894_v12 = vsub.f32 %v2284_v57, %v809_v35 }
 0x224   : > { %v2444_v26 = vpop.eup %1810  ;;  %1824 = vpow2.f32 %v998_v30  ;;  %v892_v35 = vsub.f32 %v2278_v54, %v2430_v14  ;;  %v893_v7 = vsub.f32 %v2280_v55, %v2430_v14 }
 0x225   : > { %v2446_v27 = vpop.eup %1812  ;;  %v1000_v9 = vmul.f32 1.442695, %v906_v5  ;;  %v1002_v29 = vmul.f32 1.442695, %v907_v6  ;;  %v976_v59 = vmul.f32 1.442695, %v894_v12 }
 0x226   : > { %v2448_v60 = vpop.xlane.xlu1 %799  ;;  %v1101_v61 = vadd.f32 %v2446_v27, %v2444_v26  ;;  %v974_v55 = vmul.f32 1.442695, %v893_v7 }
 0x227   : > { %1826 = vpow2.f32 %v1000_v9  ;;  %v972_v9 = vmul.f32 1.442695, %v892_v35 }
 0x228   : > { %v2452_v62 = vpop.eup %1814  ;;  %1828 = vpow2.f32 %v1002_v29  ;;  %1102 = vadd.xlane.f32.xlu1 %v1101_v61 }
 0x229   : > { %v2454_v11 = vpop.eup %1816  ;;  %1830 = vpow2.f32 %v980_v8 }
 0x22a   : > { %1832 = vpow2.f32 %v982_v16  ;;  %v2458_v25 = vpop.xlane.xlu1 %796  ;;  %v1104_v19 = vadd.f32 %v2454_v11, %v2452_v62 }
 0x22b   : > { %1834 = vpow2.f32 %v976_v59 }
 0x22c   : > { %v2462_v63 = vpop.eup %1818  ;;  %1105 = vadd.xlane.f32.xlu1 %v1104_v19  ;;  %1836 = vpow2.f32 %v978_v10 }
 0x22d   : > { %v2464_v0 = vpop.eup %1820 }
 0x22e   : > { %v2466_v2 = vpop.xlane.xlu1 %793  ;;  %v1107_v57 = vadd.f32 %v2464_v0, %v2462_v63 }
 0x230   : > { %v2470_v3 = vpop.eup %1822  ;;  %1108 = vadd.xlane.f32.xlu1 %v1107_v57 }
 0x231   : > { %v2472_v58 = vpop.eup %1824 }
 0x232   : > { %v791_v30 = vpop.xlane.xlu1 %790  ;;  %v1110_v31 = vadd.f32 %v2472_v58, %v2470_v3 }
 0x233   : > { %v882_v15 = vsub.f32 %v2256_v43, %v791_v30  ;;  %v883_v5 = vsub.f32 %v2258_v44, %v791_v30  ;;  %v890_v43 = vsub.f32 %v2272_v51, %v2428_v36  ;;  %v891_v44 = vsub.f32 %v2274_v52, %v2428_v36 }
 0x234   : > { %v2482_v6 = vpop.eup %1826  ;;  %1111 = vadd.xlane.f32.xlu1 %v1110_v31  ;;  %v837_v31 = vmax.f32 %v2344_v23, %v2346_v24 }
 0x235   : > { %v2484_v8 = vpop.eup %1828  ;;  %v952_v54 = vmul.f32 1.442695, %v882_v15  ;;  %v954_v29 = vmul.f32 1.442695, %v883_v5  ;;  %v968_v57 = vmul.f32 1.442695, %v890_v43 }
 0x236   : > { %v2486_v16 = vpop.eup %1830  ;;  %v2488_v14 = vpop.xlane.xlu1 %787  ;;  %v1113_v61 = vadd.f32 %v2484_v8, %v2482_v6  ;;  %v970_v51 = vmul.f32 1.442695, %v891_v44 }
 0x237   : > { %v2492_v12 = vpop.eup %1832  ;;  %1838 = vpow2.f32 %v952_v54  ;;  %v886_v54 = vsub.f32 %v2264_v47, %v2458_v25  ;;  %v884_v47 = vsub.f32 %v2260_v45, %v2466_v2  ;;  %v831_v45 = vmax.f32 %v2332_v17, %v2334_v18 }
 0x238   : > { %1840 = vpow2.f32 %v954_v29  ;;  %1114 = vadd.xlane.f32.xlu1 %v1113_v61  ;;  %v1098_v19 = vadd.f32 %v2492_v12, %v2486_v16  ;;  %v2502_v30 = vpop.eup %1834 }
 0x239   : > { %1842 = vpow2.f32 %v972_v9  ;;  %v2506_v52 = vpop.eup %1836  ;;  %v960_v43 = vmul.f32 1.442695, %v886_v54  ;;  %v3086_v54 = vld [vmem:[#allocation6_spill] sm:$0xff] }
 0x23a   : > { %1844 = vpow2.f32 %v974_v55  ;;  %v785_v22 = vpop.xlane.xlu1 %784  ;;  %v1095_v36 = vadd.f32 %v2506_v52, %v2502_v30 }
 0x23b   : > { %v878_v59 = vsub.f32 %v2248_v39, %v785_v22  ;;  %v879_v10 = vsub.f32 %v2250_v40, %v785_v22  ;;  %v888_v39 = vsub.f32 %v2268_v49, %v2448_v60  ;;  %v889_v40 = vsub.f32 %v2270_v50, %v2448_v60 }
 0x23c   : > { %1099 = vadd.xlane.f32.xlu1 %v1098_v19  ;;  %v887_v49 = vsub.f32 %v2266_v48, %v2458_v25  ;;  %v834_v60 = vmax.f32 %v2338_v20, %v2340_v21  ;;  %v885_v48 = vsub.f32 %v2262_v46, %v2466_v2  ;;  %v881_v2 = vsub.f32 %v2254_v42, %v2488_v14 }
 0x23d   : > { %v944_v35 = vmul.f32 1.442695, %v878_v59  ;;  %v946_v7 = vmul.f32 1.442695, %v879_v10  ;;  %v964_v9 = vmul.f32 1.442695, %v888_v39  ;;  %v880_v10 = vsub.f32 %v2252_v41, %v2488_v14 }
 0x23e   : > { %v966_v55 = vmul.f32 1.442695, %v889_v40  ;;  %v962_v44 = vmul.f32 1.442695, %v887_v49  ;;  %v956_v59 = vmul.f32 1.442695, %v884_v47 }
 0x23f   : > { %1846 = vpow2.f32 %v944_v35  ;;  %v958_v46 = vmul.f32 1.442695, %v885_v48  ;;  %v782_v35 = vpop.xlane.xlu1 %781  ;;  %v948_v41 = vmul.f32 1.442695, %v880_v10  ;;  %v950_v39 = vmul.f32 1.442695, %v881_v2 }
 0x240   : > { %1848 = vpow2.f32 %v946_v7  ;;  %838 = vmax.xlane.f32.xlu1 %v837_v31  ;;  %v876_v31 = vsub.f32 %v2244_v37, %v782_v35  ;;  %v877_v40 = vsub.f32 %v2246_v38, %v782_v35 }
 0x241   : > { %1850 = vpow2.f32 %v968_v57 }
 0x242   : > { %1852 = vpow2.f32 %v970_v51  ;;  %v940_v42 = vmul.f32 1.442695, %v876_v31 }
 0x243   : > { %1854 = vpow2.f32 %v964_v9  ;;  %v942_v9 = vmul.f32 1.442695, %v877_v40 }
 0x244   : > { %v2514_v15 = vpop.eup %1838  ;;  %1096 = vadd.xlane.f32.xlu1 %v1095_v36  ;;  %1856 = vpow2.f32 %v966_v55  ;;  %v3087_v55 = vld [vmem:[#allocation5_spill] sm:$0xff] }
 0x245   : > { %v2516_v5 = vpop.eup %1840  ;;  %1858 = vpow2.f32 %v960_v43  ;;  %v828_v49 = vmax.f32 %v3087_v55, %v3086_v54 }
 0x246   : > { %v2520_v29 = vpop.eup %1842  ;;  %v1077_v50 = vadd.f32 %v2516_v5, %v2514_v15  ;;  %1860 = vpow2.f32 %v962_v44 }
 0x247   : > { %v2528_v61 = vpop.eup %1844  ;;  %1862 = vpow2.f32 %v956_v59 }
 0x248   : > { %1078 = vadd.xlane.f32.xlu0 %v1077_v50  ;;  %835 = vmax.xlane.f32.xlu1 %v834_v60  ;;  %v1092_v25 = vadd.f32 %v2528_v61, %v2520_v29  ;;  %1864 = vpow2.f32 %v958_v46  ;;  %v3088_v46 = vld [vmem:[#allocation17_spill] sm:$0xff] }
 0x249   : > { %1866 = vpow2.f32 %v948_v41 }
 0x24a   : > { %1868 = vpow2.f32 %v950_v39 }
 0x24b   : > { %1870 = vpow2.f32 %v940_v42 }
 0x24c   : > { %v2536_v22 = vpop.eup %1846  ;;  %1093 = vadd.xlane.f32.xlu1 %v1092_v25  ;;  %1872 = vpow2.f32 %v942_v9 }
 0x24d   : > { %v2538_v19 = vpop.eup %1848 }
 0x24e   : > { %v2544_v57 = vpop.eup %1850  ;;  %v1071_v7 = vadd.f32 %v2538_v19, %v2536_v22 }
 0x24f   : > { %v2550_v51 = vpop.eup %1852 }
 0x250   : > { %1072 = vadd.xlane.f32.xlu0 %v1071_v7  ;;  %832 = vmax.xlane.f32.xlu1 %v831_v45  ;;  %v1089_v36 = vadd.f32 %v2550_v51, %v2544_v57  ;;  %v2556_v14 = vpop.eup %1854 }
 0x251   : > { %v2560_v50 = vpop.eup %1856 }
 0x252   : > { %v2562_v37 = vpop.eup %1858  ;;  %v1086_v60 = vadd.f32 %v2560_v50, %v2556_v14 }
 0x253   : > { %v2568_v43 = vpop.eup %1860 }
 0x254   : > { %1090 = vadd.xlane.f32.xlu1 %v1089_v36  ;;  %v2570_v47 = vpop.eup %1862  ;;  %v1083_v25 = vadd.f32 %v2568_v43, %v2562_v37 }
 0x255   : > { %v2574_v59 = vpop.eup %1864 }
 0x256   : > { %v2580_v41 = vpop.eup %1866  ;;  %v1080_v40 = vadd.f32 %v2574_v59, %v2570_v47 }
 0x257   : > { %v2586_v36 = vpop.eup %1868 }
 0x258   : > { %829 = vmax.xlane.f32.xlu1 %v828_v49  ;;  %v1074_v9 = vadd.f32 %v2586_v36, %v2580_v41 }
 0x25a   : > { %v2564_v38 = vpop.xlane.xlu1 %868 }
 0x25c   : > { %1087 = vadd.xlane.f32.xlu1 %v1086_v60 }
 0x25e   : > { %v866_v44 = vpop.xlane.xlu1 %865  ;;  %v872_v48 = vpop.xlane.xlu0 %871 }
 0x25f   : > { %v932_v10 = vsub.f32 %v2388_v13, %v866_v44  ;;  %v936_v45 = vsub.f32 %v2398_v28, %v872_v48  ;;  %v933_v2 = vsub.f32 %v3088_v46, %v866_v44  ;;  %v937_v35 = vsub.f32 %v2402_v34, %v872_v48  ;;  %v2588_v28 = vpop.eup %1870 }
 0x260   : > { %1084 = vadd.xlane.f32.xlu1 %v1083_v25  ;;  %v2592_v49 = vpop.eup %1872 }
 0x261   : > { %v1060_v7 = vmul.f32 1.442695, %v936_v45  ;;  %v1062_v31 = vmul.f32 1.442695, %v937_v35  ;;  %v1052_v42 = vmul.f32 1.442695, %v932_v10  ;;  %v1068_v45 = vadd.f32 %v2592_v49, %v2588_v28 }
 0x262   : > { %v2582_v39 = vpop.xlane.xlu1 %862  ;;  %v1054_v13 = vmul.f32 1.442695, %v933_v2 }
 0x263   : > { %1874 = vpow2.f32 %v1060_v7 }
 0x264   : > { %1081 = vadd.xlane.f32.xlu1 %v1080_v40  ;;  %1876 = vpow2.f32 %v1062_v31 }
 0x265   : > { %1878 = vpow2.f32 %v1052_v42 }
 0x266   : > { %v860_v34 = vpop.xlane.xlu1 %859  ;;  %1880 = vpow2.f32 %v1054_v13 }
 0x267   : > { %v928_v60 = vsub.f32 %v2380_v1, %v860_v34  ;;  %v929_v44 = vsub.f32 %v2382_v4, %v860_v34 }
 0x268   : > { %1075 = vadd.xlane.f32.xlu1 %v1074_v9 }
 0x269   : > { %v1044_v48 = vmul.f32 1.442695, %v928_v60  ;;  %v1046_v25 = vmul.f32 1.442695, %v929_v44 }
 0x26a   : > { %v2596_v10 = vpop.xlane.xlu1 %856 }
 0x26b   : > { %1882 = vpow2.f32 %v1044_v48 }
 0x26c   : > { %1884 = vpow2.f32 %v1046_v25  ;;  %1069 = vadd.xlane.f32.xlu1 %v1068_v45  ;;  %v3094_v25 = vld [vmem:[#allocation18_spill] sm:$0xff] }
 0x26d   : > { %v934_v45 = vsub.f32 %v3094_v25, %v2564_v38 }
 0x26e   : > { %v854_v46 = vpop.xlane.xlu1 %853 }
 0x26f   : > { %v924_v2 = vsub.f32 %v2372_v53, %v854_v46  ;;  %v925_v35 = vsub.f32 %v2374_v56, %v854_v46  ;;  %v1056_v25 = vmul.f32 1.442695, %v934_v45 }
 0x270   : > { %v2602_v4 = vpop.eup %1874 }
 0x271   : > { %v1036_v1 = vmul.f32 1.442695, %v924_v2  ;;  %v1038_v7 = vmul.f32 1.442695, %v925_v35  ;;  %3089 = vst [vmem:[#allocation6_spill] sm:$0xff] %v2602_v4  ;;  %v2606_v40 = vpop.eup %1876  ;;  %v3095_v35 = vld [vmem:[#allocation19_spill] sm:$0xff] }
 0x272   : > { %v2604_v31 = vpop.xlane.xlu1 %850  ;;  %3090 = vst [vmem:[#allocation5_spill] sm:$0xff] %v2606_v40  ;;  %v2608_v42 = vpop.eup %1878  ;;  %v1158_v13 = vadd.f32 %v2606_v40, %v2602_v4 }
 0x273   : > { %1886 = vpow2.f32 %v1036_v1  ;;  %3091 = vst [vmem:[#allocation17_spill] sm:$0xff] %v2608_v42  ;;  %v2612_v34 = vpop.eup %1880  ;;  %v935_v1 = vsub.f32 %v3095_v35, %v2564_v38  ;;  %v3099_v38 = vld [vmem:[#allocation16_spill] sm:$0xff] }
 0x274   : > { %1888 = vpow2.f32 %v1038_v7  ;;  %3092 = vst [vmem:[#allocation22_spill] sm:$0xff] %v2612_v34  ;;  %1159 = vadd.xlane.f32.xlu1 %v1158_v13  ;;  %v1152_v44 = vadd.f32 %v2612_v34, %v2608_v42  ;;  %v3098_v34 = vld [vmem:[#allocation15_spill] sm:$0xff] }
 0x275   : > { %v930_v4 = vsub.f32 %v3098_v34, %v2582_v39  ;;  %v1058_v40 = vmul.f32 1.442695, %v935_v1  ;;  %v3100_v34 = vld [vmem:[#allocation13_spill] sm:$0xff] }
 0x276   : > { %v848_v53 = vpop.xlane.xlu1 %847 }
 0x277   : > { %v920_v56 = vsub.f32 %v2362_v32, %v848_v53  ;;  %v921_v9 = vsub.f32 %v2364_v33, %v848_v53  ;;  %v3096_v33 = vld [vmem:[#allocation20_spill] sm:$0xff]  ;;  %v3097_v53 = vld [vmem:[#allocation21_spill] sm:$0xff] }
 0x278   : > { %v2616_v60 = vpop.eup %1882  ;;  %1153 = vadd.xlane.f32.xlu1 %v1152_v44  ;;  %v931_v44 = vsub.f32 %v3099_v38, %v2582_v39 }
 0x279   : > { %3093 = vst [vmem:[#allocation23_spill] sm:$0xff] %v2616_v60  ;;  %v2620_v48 = vpop.eup %1884  ;;  %v1028_v46 = vmul.f32 1.442695, %v920_v56  ;;  %v1030_v2 = vmul.f32 1.442695, %v921_v9 }
 0x27a   : > { %v875_v7 = vpop.xlane.xlu1 %874  ;;  %v1146_v32 = vadd.f32 %v2620_v48, %v2616_v60  ;;  %v1050_v45 = vmul.f32 1.442695, %v931_v44 }
 0x27b   : > { %1890 = vpow2.f32 %v1028_v46  ;;  %v938_v13 = vsub.f32 %v3096_v33, %v875_v7  ;;  %v939_v42 = vsub.f32 %v3097_v53, %v875_v7  ;;  %v1048_v46 = vmul.f32 1.442695, %v930_v4  ;;  %v3103_v53 = vld [vmem:[#allocation8_spill] sm:$0xff] }
 0x27c   : > { %1892 = vpow2.f32 %v1030_v2  ;;  %1147 = vadd.xlane.f32.xlu1 %v1146_v32  ;;  %v926_v2 = vsub.f32 %v3100_v34, %v2596_v10  ;;  %v3102_v32 = vld [vmem:[#allocation7_spill] sm:$0xff] }
 0x27d   : > { %v1064_v56 = vmul.f32 1.442695, %v938_v13  ;;  %v1066_v9 = vmul.f32 1.442695, %v939_v42  ;;  %v3101_v42 = vld [vmem:[#allocation14_spill] sm:$0xff] }
 0x27e   : > { %v845_v35 = vpop.xlane.xlu1 %844  ;;  %v927_v1 = vsub.f32 %v3101_v42, %v2596_v10  ;;  %v3105_v10 = vld [vmem:[#allocation12_spill] sm:$0xff] }
 0x27f   : > { %1894 = vpow2.f32 %v1064_v56  ;;  %v1040_v56 = vmul.f32 1.442695, %v926_v2  ;;  %v923_v34 = vsub.f32 %v3105_v10, %v2604_v31 }
 0x280   : > { %v2634_v60 = vpop.eup %1886  ;;  %1896 = vpow2.f32 %v1066_v9  ;;  %v1042_v44 = vmul.f32 1.442695, %v927_v1 }
 0x281   : > { %v2636_v33 = vpop.eup %1888  ;;  %1898 = vpow2.f32 %v1056_v25  ;;  %v3104_v25 = vld [vmem:[#allocation11_spill] sm:$0xff] }
 0x282   : > { %1900 = vpow2.f32 %v1058_v40  ;;  %v842_v7 = vpop.xlane.xlu1 %841  ;;  %v1140_v39 = vadd.f32 %v2636_v33, %v2634_v60  ;;  %v922_v9 = vsub.f32 %v3104_v25, %v2604_v31 }
 0x283   : > { %v916_v13 = vsub.f32 %v3102_v32, %v842_v7  ;;  %v917_v4 = vsub.f32 %v3103_v53, %v842_v7  ;;  %1902 = vpow2.f32 %v1048_v46  ;;  %v3106_v7 = vld [vmem:[#allocation9_spill] sm:$0xff]  ;;  %v3107_v53 = vld [vmem:[#allocation10_spill] sm:$0xff] }
 0x284   : > { %1141 = vadd.xlane.f32.xlu1 %v1140_v39  ;;  %1904 = vpow2.f32 %v1050_v45  ;;  %v1032_v46 = vmul.f32 1.442695, %v922_v9  ;;  %v918_v2 = vsub.f32 %v3106_v7, %v845_v35  ;;  %v1034_v39 = vmul.f32 1.442695, %v923_v34 }
 0x285   : > { %v1020_v38 = vmul.f32 1.442695, %v916_v13  ;;  %v1022_v40 = vmul.f32 1.442695, %v917_v4  ;;  %v919_v13 = vsub.f32 %v3107_v53, %v845_v35 }
 0x286   : > { %v1024_v4 = vmul.f32 1.442695, %v918_v2 }
 0x287   : > { %1906 = vpow2.f32 %v1020_v38 }
 0x288   : > { %v2650_v42 = vpop.eup %1890  ;;  %1908 = vpow2.f32 %v1022_v40 }
 0x289   : > { %v2652_v32 = vpop.eup %1892  ;;  %1910 = vpow2.f32 %v1040_v56  ;;  %v1026_v56 = vmul.f32 1.442695, %v919_v13 }
 0x28a   : > { %1912 = vpow2.f32 %v1042_v44  ;;  %v1134_v45 = vadd.f32 %v2652_v32, %v2650_v42 }
 0x28b   : > { %1914 = vpow2.f32 %v1032_v46 }
 0x28c   : > { %v2658_v1 = vpop.eup %1894  ;;  %1135 = vadd.xlane.f32.xlu1 %v1134_v45  ;;  %1916 = vpow2.f32 %v1034_v39 }
 0x28d   : > { %v2660_v31 = vpop.eup %1896  ;;  %1918 = vpow2.f32 %v1024_v4 }
 0x28e   : > { %v2662_v25 = vpop.eup %1898  ;;  %v1161_v9 = vadd.f32 %v2660_v31, %v2658_v1  ;;  %1920 = vpow2.f32 %v1026_v56 }
 0x28f   : > { %v2666_v38 = vpop.eup %1900 }
 0x290   : > { %1162 = vadd.xlane.f32.xlu0 %v1161_v9  ;;  %v2668_v35 = vpop.eup %1902  ;;  %v1155_v40 = vadd.f32 %v2666_v38, %v2662_v25 }
 0x291   : > { %3108 = vst [vmem:[#allocation18_spill] sm:$0xff] %v2668_v35  ;;  %v2672_v44 = vpop.eup %1904 }
 0x292   : > { %v1149_v7 = vadd.f32 %v2672_v44, %v2668_v35 }
 0x294   : > { %v2674_v10 = vpop.eup %1906  ;;  %1156 = vadd.xlane.f32.xlu0 %v1155_v40 }
 0x295   : > { %v2676_v34 = vpop.eup %1908 }
 0x296   : > { %v2678_v46 = vpop.eup %1910  ;;  %v1128_v2 = vadd.f32 %v2676_v34, %v2674_v10 }
 0x297   : > { %3109 = vst [vmem:[#allocation19_spill] sm:$0xff] %v2678_v46  ;;  %v2684_v39 = vpop.eup %1912 }
 0x298   : > { %3110 = vst [vmem:[#allocation20_spill] sm:$0xff] %v2684_v39  ;;  %1150 = vadd.xlane.f32.xlu0 %v1149_v7  ;;  %1129 = vadd.xlane.f32.xlu1 %v1128_v2  ;;  %v2686_v53 = vpop.eup %1914  ;;  %v1143_v13 = vadd.f32 %v2684_v39, %v2678_v46 }
 0x299   : > { %3111 = vst [vmem:[#allocation21_spill] sm:$0xff] %v2686_v53  ;;  %v2690_v45 = vpop.eup %1916 }
 0x29a   : > { %3112 = vst [vmem:[#allocation15_spill] sm:$0xff] %v2690_v45  ;;  %v2692_v4 = vpop.eup %1918  ;;  %v1137_v56 = vadd.f32 %v2690_v45, %v2686_v53 }
 0x29b   : > { %3113 = vst [vmem:[#allocation16_spill] sm:$0xff] %v2692_v4  ;;  %v2696_v9 = vpop.eup %1920 }
 0x29c   : > { %1144 = vadd.xlane.f32.xlu0 %v1143_v13  ;;  %3114 = vst [vmem:[#allocation13_spill] sm:$0xff] %v2696_v9  ;;  %v1131_v40 = vadd.f32 %v2696_v9, %v2692_v4 }
 0x2a0   : > { %1138 = vadd.xlane.f32.xlu0 %v1137_v56 }
 0x2a4   : > { %1132 = vadd.xlane.f32.xlu0 %v1131_v40 }
 0x2b1   : > { %v1103_v7 = vpop.xlane.xlu1 %1102 }
 0x2b2   : > { %1922 = vrcp.f32 %v1103_v7 }
 0x2b5   : > { %v1106_v2 = vpop.xlane.xlu1 %1105 }
 0x2b6   : > { %1924 = vrcp.f32 %v1106_v2 }
 0x2b9   : > { %v1109_v46 = vpop.xlane.xlu1 %1108 }
 0x2ba   : > { %1926 = vrcp.f32 %v1109_v46 }
 0x2bd   : > { %v1112_v13 = vpop.xlane.xlu1 %1111 }
 0x2be   : > { %1928 = vrcp.f32 %v1112_v13 }
 0x2bf   : > { %v1923_v39 = vpop.eup %1922 }
 0x2c0   : > { %v2704_v53 = vmul.f32 %v1923_v39, %v2446_v27  ;;  %v2707_v56 = vmul.f32 %v1923_v39, %v2444_v26 }
 0x2c1   : > { %v1115_v4 = vpop.xlane.xlu1 %1114 }
 0x2c2   : > { %1930 = vrcp.f32 %v1115_v4  ;;  %1400 = vst [vmem:[%s2709_s17 + $0xb8] sm:$0xff] %v2704_v53  ;;  %1399 = vst [vmem:[%s2709_s17 + $0xb0] sm:$0xff] %v2707_v56 }
 0x2c3   : > { %v1925_v46 = vpop.eup %1924 }
 0x2c4   : > { %v2716_v27 = vmul.f32 %v1925_v46, %v2454_v11  ;;  %v2719_v26 = vmul.f32 %v1925_v46, %v2452_v62 }
 0x2c5   : > { %v1100_v39 = vpop.xlane.xlu1 %1099 }
 0x2c6   : > { %1932 = vrcp.f32 %v1100_v39  ;;  %1402 = vst [vmem:[%s2709_s17 + $0xc8] sm:$0xff] %v2716_v27  ;;  %1401 = vst [vmem:[%s2709_s17 + $0xc0] sm:$0xff] %v2719_v26 }
 0x2c7   : > { %v1927_v4 = vpop.eup %1926 }
 0x2c8   : > { %v1255_v40 = vmul.f32 %v1927_v4, %v2464_v0  ;;  %v1254_v7 = vmul.f32 %v1927_v4, %v2462_v63 }
 0x2c9   : > { %v839_v2 = vpop.xlane.xlu1 %838 }
 0x2ca   : > { %v914_v11 = vsub.f32 %v2344_v23, %v839_v2  ;;  %v915_v13 = vsub.f32 %v2346_v24, %v839_v2  ;;  %1404 = vst [vmem:[%s2709_s17 + $0xd8] sm:$0xff] %v1255_v40  ;;  %1403 = vst [vmem:[%s2709_s17 + $0xd0] sm:$0xff] %v1254_v7 }
 0x2cb   : > { %v1929_v62 = vpop.eup %1928 }
 0x2cc   : > { %v1016_v46 = vmul.f32 1.442695, %v914_v11  ;;  %v1018_v39 = vmul.f32 1.442695, %v915_v13  ;;  %v1257_v9 = vmul.f32 %v1929_v62, %v2472_v58  ;;  %v1256_v45 = vmul.f32 %v1929_v62, %v2470_v3 }
 0x2cd   : > { %v1097_v35 = vpop.xlane.xlu1 %1096 }
 0x2ce   : > { %1934 = vpow2.f32 %v1016_v46  ;;  %1406 = vst [vmem:[%s2709_s17 + $0xe8] sm:$0xff] %v1257_v9  ;;  %1405 = vst [vmem:[%s2709_s17 + $0xe0] sm:$0xff] %v1256_v45 }
 0x2cf   : > { %v1931_v63 = vpop.eup %1930  ;;  %1936 = vpow2.f32 %v1018_v39 }
 0x2d0   : > { %1938 = vrcp.f32 %v1097_v35  ;;  %v1259_v23 = vmul.f32 %v1931_v63, %v2484_v8  ;;  %v1258_v24 = vmul.f32 %v1931_v63, %v2482_v6 }
 0x2d1   : > { %v836_v0 = vpop.xlane.xlu1 %835  ;;  %v1079_v4 = vpop.xlane.xlu0 %1078 }
 0x2d2   : > { %v912_v2 = vsub.f32 %v2338_v20, %v836_v0  ;;  %v913_v58 = vsub.f32 %v2340_v21, %v836_v0  ;;  %1940 = vrcp.f32 %v1079_v4  ;;  %1296 = vmatprep.subr.mxu0 %v1259_v23  ;;  %1408 = vst [vmem:[%s2709_s17 + $0xf8] sm:$0xff] %v1259_v23  ;;  %1688 = vmatprep.subr.mxu1 %v1259_v23  ;;  %1407 = vst [vmem:[%s2709_s17 + $0xf0] sm:$0xff] %v1258_v24 }
 0x2d3   : > { %v1933_v3 = vpop.eup %1932  ;;  %1297 = vmatpush1.xpose.msra.mxu0 %v1258_v24  ;;  %1720 = vmatpush1.xpose.msra.mxu1 %v1258_v24 }
 0x2d4   : > { %v1012_v35 = vmul.f32 1.442695, %v912_v2  ;;  %v1014_v8 = vmul.f32 1.442695, %v913_v58  ;;  %1298 = vmatprep.subr.mxu0 %v1257_v9  ;;  %1689 = vmatprep.subr.mxu1 %v1257_v9  ;;  %v1249_v6 = vmul.f32 %v1933_v3, %v2492_v12  ;;  %v2743_v20 = vmul.f32 %v1933_v3, %v2486_v16 }
 0x2d5   : > { %v1094_v21 = vpop.xlane.xlu1 %1093 }
 0x2d6   : > { %1942 = vpow2.f32 %v1012_v35  ;;  %1398 = vst [vmem:[%s2709_s17 + $0xa8] sm:$0xff] %v1249_v6  ;;  %1397 = vst [vmem:[%s2709_s17 + $0xa0] sm:$0xff] %v2743_v20 }
 0x2d7   : > { %1944 = vpow2.f32 %v1014_v8  ;;  %1299 = vmatpush1.xpose.msra.mxu0 %v1256_v45  ;;  %1721 = vmatpush1.xpose.msra.mxu1 %v1256_v45 }
 0x2d8   : > { %1946 = vrcp.f32 %v1094_v21  ;;  %1300 = vmatprep.subr.mxu0 %v1255_v40  ;;  %1690 = vmatprep.subr.mxu1 %v1255_v40 }
 0x2d9   : > { %v833_v11 = vpop.xlane.xlu1 %832  ;;  %v1073_v13 = vpop.xlane.xlu0 %1072 }
 0x2da   : > { %v910_v9 = vsub.f32 %v2332_v17, %v833_v11  ;;  %v911_v12 = vsub.f32 %v2334_v18, %v833_v11  ;;  %1948 = vrcp.f32 %v1073_v13 }
 0x2db   : > { %v2750_v16 = vpop.eup %1934  ;;  %1301 = vmatpush1.xpose.msra.mxu0 %v1254_v7  ;;  %1722 = vmatpush1.xpose.msra.mxu1 %v1254_v7 }
 0x2dc   : > { %v2752_v62 = vpop.eup %1936  ;;  %v1008_v46 = vmul.f32 1.442695, %v910_v9  ;;  %v1010_v39 = vmul.f32 1.442695, %v911_v12  ;;  %1302 = vmatprep.subr.mxu0 %v2716_v27  ;;  %1691 = vmatprep.subr.mxu1 %v2716_v27 }
 0x2dd   : > { %v1939_v45 = vpop.eup %1938  ;;  %v1091_v40 = vpop.xlane.xlu1 %1090  ;;  %v1125_v17 = vadd.f32 %v2752_v62, %v2750_v16 }
 0x2de   : > { %1950 = vpow2.f32 %v1008_v46  ;;  %v1247_v18 = vmul.f32 %v1939_v45, %v2506_v52  ;;  %v1246_v7 = vmul.f32 %v1939_v45, %v2502_v30 }
 0x2df   : > { %v1941_v63 = vpop.eup %1940  ;;  %1952 = vpow2.f32 %v1010_v39  ;;  %1126 = vadd.xlane.f32.xlu0 %v1125_v17  ;;  %1303 = vmatpush1.xpose.msra.mxu0 %v2719_v26 }
 0x2e0   : > { %1954 = vrcp.f32 %v1091_v40  ;;  %1723 = vmatpush1.xpose.msra.mxu1 %v2719_v26  ;;  %1304 = vmatprep.subr.mxu0 %v2704_v53  ;;  %1396 = vst [vmem:[%s2709_s17 + $0x98] sm:$0xff] %v1247_v18  ;;  %1395 = vst [vmem:[%s2709_s17 + $0x90] sm:$0xff] %v1246_v7  ;;  %v2766_v27 = vmul.f32 %v1941_v63, %v2516_v5  ;;  %v2769_v52 = vmul.f32 %v1941_v63, %v2514_v15 }
 0x2e1   : > { %1692 = vmatprep.subr.mxu1 %v2704_v53  ;;  %v830_v30 = vpop.xlane.xlu1 %829 }
 0x2e2   : > { %v908_v23 = vsub.f32 %v3087_v55, %v830_v30  ;;  %v909_v24 = vsub.f32 %v3086_v54, %v830_v30  ;;  %1384 = vst [vmem:[%s2709_s17 + $0x38] sm:$0xff] %v2766_v27  ;;  %1383 = vst [vmem:[%s2709_s17 + $0x30] sm:$0xff] %v2769_v52 }
 0x2e3   : > { %v2778_v26 = vpop.eup %1942  ;;  %1305 = vmatpush1.xpose.msra.mxu0 %v2707_v56 }
 0x2e4   : > { %v2781_v5 = vpop.eup %1944  ;;  %v1004_v0 = vmul.f32 1.442695, %v908_v23  ;;  %v1006_v15 = vmul.f32 1.442695, %v909_v24  ;;  %1724 = vmatpush1.xpose.msra.mxu1 %v2707_v56  ;;  %1306 = vmatprep.subr.mxu0 %v1249_v6 }
 0x2e5   : > { %v1947_v55 = vpop.eup %1946  ;;  %1693 = vmatprep.subr.mxu1 %v1249_v6  ;;  %v1088_v54 = vpop.xlane.xlu1 %1087  ;;  %v1122_v53 = vadd.f32 %v2781_v5, %v2778_v26 }
 0x2e6   : > { %1956 = vpow2.f32 %v1004_v0  ;;  %v1245_v4 = vmul.f32 %v1947_v55, %v2528_v61  ;;  %v1244_v2 = vmul.f32 %v1947_v55, %v2520_v29  ;;  %v3117_v0 = vld [vmem:[#allocation22_spill] sm:$0xff]  ;;  %v3118_v55 = vld [vmem:[#allocation17_spill] sm:$0xff] }
 0x2e7   : > { %v1949_v58 = vpop.eup %1948  ;;  %1958 = vpow2.f32 %v1006_v15  ;;  %1123 = vadd.xlane.f32.xlu1 %v1122_v53  ;;  %1307 = vmatpush1.xpose.msra.mxu0 %v2743_v20  ;;  %v359_v53 = vld [vmem:[%s2866_s29 + $0x8] sm:$0xff] }
 0x2e8   : > { %1960 = vrcp.f32 %v1088_v54  ;;  %1725 = vmatpush1.xpose.msra.mxu1 %v2743_v20  ;;  %1308 = vmatprep.subr.mxu0 %v1247_v18  ;;  %1394 = vst [vmem:[%s2709_s17 + $0x88] sm:$0xff] %v1245_v4  ;;  %1393 = vst [vmem:[%s2709_s17 + $0x80] sm:$0xff] %v1244_v2  ;;  %v2793_v56 = vmul.f32 %v1949_v58, %v2538_v19  ;;  %v2796_v61 = vmul.f32 %v1949_v58, %v2536_v22 }
 0x2e9   : > { %1694 = vmatprep.subr.mxu1 %v1247_v18  ;;  %v1085_v29 = vpop.xlane.xlu1 %1084  ;;  %1360 = vmatprep.mubr.f32.mxu0 %v359_v53 }
 0x2ea   : > { %1962 = vrcp.f32 %v1085_v29  ;;  %1380 = vst [vmem:[%s2709_s17 + $0x18] sm:$0xff] %v2793_v56  ;;  %1379 = vst [vmem:[%s2709_s17 + $0x10] sm:$0xff] %v2796_v61 }
 0x2eb   : > { %v2802_v3 = vpop.eup %1950  ;;  %1309 = vmatpush1.xpose.msra.mxu0 %v1246_v7 }
 0x2ec   : > { %v2804_v35 = vpop.eup %1952  ;;  %1726 = vmatpush1.xpose.msra.mxu1 %v1246_v7  ;;  %1310 = vmatprep.subr.mxu0 %v1245_v4 }
 0x2ed   : > { %v1955_v19 = vpop.eup %1954  ;;  %1695 = vmatprep.subr.mxu1 %v1245_v4  ;;  %v1082_v22 = vpop.xlane.xlu1 %1081  ;;  %v1119_v8 = vadd.f32 %v2804_v35, %v2802_v3  ;;  %v361_v4 = vld [vmem:[%s2866_s29 + $0x18] sm:$0xff] }
 0x2ee   : > { %1964 = vrcp.f32 %v1082_v22  ;;  %v1243_v6 = vmul.f32 %v1955_v19, %v2550_v51  ;;  %v1242_v20 = vmul.f32 %v1955_v19, %v2544_v57  ;;  %1366 = vmatprep.mubr.f32.mxu1 %v361_v4 }
 0x2ef   : > { %1120 = vadd.xlane.f32.xlu0 %v1119_v8  ;;  %1311 = vmatpush1.xpose.msra.mxu0 %v1244_v2 }
 0x2f0   : > { %1727 = vmatpush1.xpose.msra.mxu1 %v1244_v2  ;;  %1312 = vmatprep.subr.mxu0 %v1243_v6  ;;  %1392 = vst [vmem:[%s2709_s17 + $0x78] sm:$0xff] %v1243_v6  ;;  %1391 = vst [vmem:[%s2709_s17 + $0x70] sm:$0xff] %v1242_v20 }
 0x2f1   : > { %1696 = vmatprep.subr.mxu1 %v1243_v6  ;;  %v1076_v21 = vpop.xlane.xlu1 %1075 }
 0x2f2   : > { %1966 = vrcp.f32 %v1076_v21 }
 0x2f3   : > { %v2812_v11 = vpop.eup %1956  ;;  %1313 = vmatpush1.xpose.msra.mxu0 %v1242_v20 }
 0x2f4   : > { %v2814_v13 = vpop.eup %1958  ;;  %1728 = vmatpush1.xpose.msra.mxu1 %v1242_v20 }
 0x2f5   : > { %v1961_v51 = vpop.eup %1960  ;;  %v1070_v9 = vpop.xlane.xlu1 %1069  ;;  %v1116_v57 = vadd.f32 %v2814_v13, %v2812_v11 }
 0x2f6   : > { %1968 = vrcp.f32 %v1070_v9  ;;  %v1241_v12 = vmul.f32 %v1961_v51, %v2560_v50  ;;  %v1240_v46 = vmul.f32 %v1961_v51, %v2556_v14 }
 0x2f7   : > { %v1963_v39 = vpop.eup %1962  ;;  %1117 = vadd.xlane.f32.xlu1 %v1116_v57 }
 0x2f8   : > { %1314 = vmatprep.subr.mxu0 %v1241_v12  ;;  %1390 = vst [vmem:[%s2709_s17 + $0x68] sm:$0xff] %v1241_v12  ;;  %1697 = vmatprep.subr.mxu1 %v1241_v12  ;;  %1389 = vst [vmem:[%s2709_s17 + $0x60] sm:$0xff] %v1240_v46  ;;  %v1239_v45 = vmul.f32 %v1963_v39, %v2568_v43  ;;  %v1238_v40 = vmul.f32 %v1963_v39, %v2562_v37 }
 0x2f9   : > { %1315 = vmatpush1.xpose.msra.mxu0 %v1240_v46  ;;  %1729 = vmatpush1.xpose.msra.mxu1 %v1240_v46 }
 0x2fa   : > { %1316 = vmatprep.subr.mxu0 %v1239_v45  ;;  %1388 = vst [vmem:[%s2709_s17 + $0x58] sm:$0xff] %v1239_v45  ;;  %1698 = vmatprep.subr.mxu1 %v1239_v45  ;;  %1387 = vst [vmem:[%s2709_s17 + $0x50] sm:$0xff] %v1238_v40 }
 0x2fb   : > { %v1965_v50 = vpop.eup %1964 }
 0x2fc   : > { %v1237_v14 = vmul.f32 %v1965_v50, %v2574_v59  ;;  %v1236_v17 = vmul.f32 %v1965_v50, %v2570_v47 }
 0x2fd   : > { %1317 = vmatpush1.xpose.msra.mxu0 %v1238_v40  ;;  %1730 = vmatpush1.xpose.msra.mxu1 %v1238_v40  ;;  %v1160_v43 = vpop.xlane.xlu1 %1159 }
 0x2fe   : > { %1318 = vmatprep.subr.mxu0 %v1237_v14  ;;  %1386 = vst [vmem:[%s2709_s17 + $0x48] sm:$0xff] %v1237_v14  ;;  %1699 = vmatprep.subr.mxu1 %v1237_v14  ;;  %1385 = vst [vmem:[%s2709_s17 + $0x40] sm:$0xff] %v1236_v17  ;;  %1970 = vrcp.f32 %v1160_v43  ;;  %v3120_v14 = vld [vmem:[#allocation18_spill] sm:$0xff] }
 0x2ff   : > { %v1967_v37 = vpop.eup %1966 }
 0x300   : > { %v1233_v18 = vmul.f32 %v1967_v37, %v2586_v36  ;;  %v1232_v7 = vmul.f32 %v1967_v37, %v2580_v41 }
 0x301   : > { %1319 = vmatpush1.xpose.msra.mxu0 %v1236_v17  ;;  %1731 = vmatpush1.xpose.msra.mxu1 %v1236_v17  ;;  %v1154_v59 = vpop.xlane.xlu1 %1153 }
 0x302   : > { %1320 = vmatprep.subr.mxu0 %v2766_v27  ;;  %1700 = vmatprep.subr.mxu1 %v2766_v27  ;;  %1382 = vst [vmem:[%s2709_s17 + $0x28] sm:$0xff] %v1233_v18  ;;  %1381 = vst [vmem:[%s2709_s17 + $0x20] sm:$0xff] %v1232_v7  ;;  %1972 = vrcp.f32 %v1154_v59  ;;  %v3124_v59 = vld [vmem:[#allocation21_spill] sm:$0xff] }
 0x303   : > { %v1969_v47 = vpop.eup %1968 }
 0x304   : > { %v1229_v63 = vmul.f32 %v1969_v47, %v2592_v49  ;;  %v1228_v30 = vmul.f32 %v1969_v47, %v2588_v28  ;;  %v3115_v49 = vld [vmem:[#allocation5_spill] sm:$0xff] }
 0x305   : > { %1321 = vmatpush1.xpose.msra.mxu0 %v2769_v52  ;;  %1732 = vmatpush1.xpose.msra.mxu1 %v2769_v52  ;;  %v1148_v41 = vpop.xlane.xlu1 %1147  ;;  %v3116_v52 = vld [vmem:[#allocation6_spill] sm:$0xff] }
 0x306   : > { %1322 = vmatprep.subr.mxu0 %v1233_v18  ;;  %1701 = vmatprep.subr.mxu1 %v1233_v18  ;;  %1378 = vst [vmem:[%s2709_s17 + $0x8] sm:$0xff] %v1229_v63  ;;  %1377 = vst [vmem:[%s2709_s17] sm:$0xff] %v1228_v30  ;;  %1974 = vrcp.f32 %v1148_v41  ;;  %v3125_v41 = vld [vmem:[#allocation13_spill] sm:$0xff] }
 0x309   : > { %1323 = vmatpush1.xpose.msra.mxu0 %v1232_v7  ;;  %1733 = vmatpush1.xpose.msra.mxu1 %v1232_v7  ;;  %v3123_v7 = vld [vmem:[#allocation15_spill] sm:$0xff] }
 0x30a   : > { %1324 = vmatprep.subr.mxu0 %v2793_v56  ;;  %1702 = vmatprep.subr.mxu1 %v2793_v56 }
 0x30b   : > { %v1971_v36 = vpop.eup %1970 }
 0x30c   : > { %v1289_v27 = vmul.f32 %v1971_v36, %v3115_v49  ;;  %v2848_v23 = vmul.f32 %v1971_v36, %v3116_v52 }
 0x30d   : > { %1325 = vmatpush1.xpose.msra.mxu0 %v2796_v61  ;;  %1734 = vmatpush1.xpose.msra.mxu1 %v2796_v61  ;;  %v1142_v28 = vpop.xlane.xlu1 %1141  ;;  %v3119_v61 = vld [vmem:[#allocation23_spill] sm:$0xff] }
 0x30e   : > { %1326 = vmatprep.subr.mxu0 %v1229_v63  ;;  %1703 = vmatprep.subr.mxu1 %v1229_v63  ;;  %1976 = vrcp.f32 %v1142_v28  ;;  %1438 = vst [vmem:[%s2709_s17 + $0x1e8] sm:$0xff] %v1289_v27  ;;  %1437 = vst [vmem:[%s2709_s17 + $0x1e0] sm:$0xff] %v2848_v23  ;;  %v3126_v28 = vld [vmem:[#allocation16_spill] sm:$0xff] }
 0x30f   : > { %v1973_v24 = vpop.eup %1972 }
 0x310   : > { %v2857_v15 = vmul.f32 %v1973_v24, %v3117_v0  ;;  %v2860_v54 = vmul.f32 %v1973_v24, %v3118_v55 }
 0x311   : > { %1327 = vmatpush1.xpose.msra.mxu0 %v1228_v30  ;;  %1735 = vmatpush1.xpose.msra.mxu1 %v1228_v30 }
 0x312   : > { %1434 = vst [vmem:[%s2709_s17 + $0x1c8] sm:$0xff] %v2857_v15  ;;  %1433 = vst [vmem:[%s2709_s17 + $0x1c0] sm:$0xff] %v2860_v54 }
 0x313   : > { %v1975_v2 = vpop.eup %1974 }
 0x314   : > { %v2875_v56 = vmul.f32 %v1975_v2, %v2620_v48  ;;  %v2878_v29 = vmul.f32 %v1975_v2, %v3119_v61 }
 0x315   : > { %v1136_v58 = vpop.xlane.xlu1 %1135 }
 0x316   : > { %1978 = vrcp.f32 %v1136_v58  ;;  %1430 = vst [vmem:[%s2709_s17 + $0x1a8] sm:$0xff] %v2875_v56  ;;  %1429 = vst [vmem:[%s2709_s17 + $0x1a0] sm:$0xff] %v2878_v29 }
 0x319   : > { %v1163_v19 = vpop.xlane.xlu0 %1162 }
 0x31a   : > { %1980 = vrcp.f32 %v1163_v19 }
 0x31b   : > { %v1977_v22 = vpop.eup %1976 }
 0x31c   : > { %v2885_v8 = vmul.f32 %v1977_v22, %v2636_v33  ;;  %v2888_v6 = vmul.f32 %v1977_v22, %v2634_v60 }
 0x31d   : > { %v1157_v48 = vpop.xlane.xlu0 %1156 }
 0x31e   : > { %1982 = vrcp.f32 %v1157_v48  ;;  %1426 = vst [vmem:[%s2709_s17 + $0x188] sm:$0xff] %v2885_v8  ;;  %1425 = vst [vmem:[%s2709_s17 + $0x180] sm:$0xff] %v2888_v6 }
 0x321   : > { %v1130_v20 = vpop.xlane.xlu1 %1129  ;;  %v1151_v21 = vpop.xlane.xlu0 %1150 }
 0x322   : > { %1984 = vrcp.f32 %v1130_v20 }
 0x323   : > { %v1979_v51 = vpop.eup %1978  ;;  %1986 = vrcp.f32 %v1151_v21 }
 0x324   : > { %v2895_v33 = vmul.f32 %v1979_v51, %v2652_v32  ;;  %v2898_v9 = vmul.f32 %v1979_v51, %v2650_v42 }
 0x325   : > { %v1145_v60 = vpop.xlane.xlu0 %1144 }
 0x326   : > { %1988 = vrcp.f32 %v1145_v60  ;;  %1422 = vst [vmem:[%s2709_s17 + $0x168] sm:$0xff] %v2895_v33  ;;  %1421 = vst [vmem:[%s2709_s17 + $0x160] sm:$0xff] %v2898_v9 }
 0x327   : > { %v1981_v57 = vpop.eup %1980 }
 0x328   : > { %v1291_v12 = vmul.f32 %v1981_v57, %v2660_v31  ;;  %v1290_v46 = vmul.f32 %v1981_v57, %v2658_v1 }
 0x329   : > { %v1139_v39 = vpop.xlane.xlu0 %1138 }
 0x32a   : > { %1990 = vrcp.f32 %v1139_v39  ;;  %1328 = vmatprep.subr.mxu0 %v1291_v12  ;;  %1440 = vst [vmem:[%s2709_s17 + $0x1f8] sm:$0xff] %v1291_v12  ;;  %1704 = vmatprep.subr.mxu1 %v1291_v12  ;;  %1439 = vst [vmem:[%s2709_s17 + $0x1f0] sm:$0xff] %v1290_v46 }
 0x32b   : > { %v1983_v42 = vpop.eup %1982  ;;  %1329 = vmatpush2.xpose.msra.mxu0 %v1290_v46  ;;  %1736 = vmatpush2.xpose.msra.mxu1 %v1290_v46 }
 0x32c   : > { %1330 = vmatprep.subr.mxu0 %v1289_v27  ;;  %1705 = vmatprep.subr.mxu1 %v1289_v27  ;;  %v1287_v32 = vmul.f32 %v1983_v42, %v2666_v38  ;;  %v1286_v31 = vmul.f32 %v1983_v42, %v2662_v25 }
 0x32d   : > { %v1133_v1 = vpop.xlane.xlu0 %1132 }
 0x32e   : > { %1992 = vrcp.f32 %v1133_v1  ;;  %1436 = vst [vmem:[%s2709_s17 + $0x1d8] sm:$0xff] %v1287_v32  ;;  %1435 = vst [vmem:[%s2709_s17 + $0x1d0] sm:$0xff] %v1286_v31 }
 0x32f   : > { %v1985_v45 = vpop.eup %1984  ;;  %1331 = vmatpush2.xpose.msra.mxu0 %v2848_v23  ;;  %1737 = vmatpush2.xpose.msra.mxu1 %v2848_v23 }
 0x330   : > { %v1987_v40 = vpop.eup %1986  ;;  %1332 = vmatprep.subr.mxu0 %v1287_v32  ;;  %1706 = vmatprep.subr.mxu1 %v1287_v32  ;;  %v1269_v38 = vmul.f32 %v1985_v45, %v2676_v34  ;;  %v1268_v25 = vmul.f32 %v1985_v45, %v2674_v10  ;;  %v3121_v34 = vld [vmem:[#allocation20_spill] sm:$0xff]  ;;  %v3122_v10 = vld [vmem:[#allocation19_spill] sm:$0xff] }
 0x331   : > { %v1283_v50 = vmul.f32 %v1987_v40, %v2672_v44  ;;  %v1282_v17 = vmul.f32 %v1987_v40, %v3120_v14 }
 0x332   : > { %1418 = vst [vmem:[%s2709_s17 + $0x148] sm:$0xff] %v1269_v38  ;;  %1417 = vst [vmem:[%s2709_s17 + $0x140] sm:$0xff] %v1268_v25 }
 0x333   : > { %v1989_v37 = vpop.eup %1988  ;;  %1333 = vmatpush2.xpose.msra.mxu0 %v1286_v31  ;;  %1738 = vmatpush2.xpose.msra.mxu1 %v1286_v31  ;;  %1432 = vst [vmem:[%s2709_s17 + $0x1b8] sm:$0xff] %v1283_v50  ;;  %1431 = vst [vmem:[%s2709_s17 + $0x1b0] sm:$0xff] %v1282_v17 }
 0x334   : > { %1334 = vmatprep.subr.mxu0 %v2857_v15  ;;  %1707 = vmatprep.subr.mxu1 %v2857_v15  ;;  %v1279_v43 = vmul.f32 %v1989_v37, %v3121_v34  ;;  %v1278_v18 = vmul.f32 %v1989_v37, %v3122_v10 }
 0x336   : > { %1428 = vst [vmem:[%s2709_s17 + $0x198] sm:$0xff] %v1279_v43  ;;  %1427 = vst [vmem:[%s2709_s17 + $0x190] sm:$0xff] %v1278_v18 }
 0x337   : > { %v1991_v44 = vpop.eup %1990  ;;  %1335 = vmatpush2.xpose.msra.mxu0 %v2860_v54  ;;  %1739 = vmatpush2.xpose.msra.mxu1 %v2860_v54 }
 0x338   : > { %1336 = vmatprep.subr.mxu0 %v1283_v50  ;;  %1708 = vmatprep.subr.mxu1 %v1283_v50  ;;  %v1275_v47 = vmul.f32 %v1991_v44, %v3123_v7  ;;  %v1274_v63 = vmul.f32 %v1991_v44, %v3124_v59 }
 0x33a   : > { %1424 = vst [vmem:[%s2709_s17 + $0x178] sm:$0xff] %v1275_v47  ;;  %1423 = vst [vmem:[%s2709_s17 + $0x170] sm:$0xff] %v1274_v63 }
 0x33b   : > { %v1993_v30 = vpop.eup %1992  ;;  %1337 = vmatpush2.xpose.msra.mxu0 %v1282_v17  ;;  %1740 = vmatpush2.xpose.msra.mxu1 %v1282_v17 }
 0x33c   : > { %1338 = vmatprep.subr.mxu0 %v2875_v56  ;;  %1709 = vmatprep.subr.mxu1 %v2875_v56  ;;  %v1271_v36 = vmul.f32 %v1993_v30, %v3125_v41  ;;  %v1270_v49 = vmul.f32 %v1993_v30, %v3126_v28 }
 0x33e   : > { %1420 = vst [vmem:[%s2709_s17 + $0x158] sm:$0xff] %v1271_v36  ;;  %1419 = vst [vmem:[%s2709_s17 + $0x150] sm:$0xff] %v1270_v49 }
 0x33f   : > { %1339 = vmatpush2.xpose.msra.mxu0 %v2878_v29  ;;  %1741 = vmatpush2.xpose.msra.mxu1 %v2878_v29 }
 0x340   : > { %1340 = vmatprep.subr.mxu0 %v1279_v43  ;;  %1710 = vmatprep.subr.mxu1 %v1279_v43 }
 0x343   : > { %1341 = vmatpush2.xpose.msra.mxu0 %v1278_v18  ;;  %1742 = vmatpush2.xpose.msra.mxu1 %v1278_v18 }
 0x344   : > { %1342 = vmatprep.subr.mxu0 %v2885_v8  ;;  %1711 = vmatprep.subr.mxu1 %v2885_v8 }
 0x347   : > { %1343 = vmatpush2.xpose.msra.mxu0 %v2888_v6  ;;  %1743 = vmatpush2.xpose.msra.mxu1 %v2888_v6 }
 0x348   : > { %1344 = vmatprep.subr.mxu0 %v1275_v47  ;;  %1712 = vmatprep.subr.mxu1 %v1275_v47 }
 0x34b   : > { %1345 = vmatpush2.xpose.msra.mxu0 %v1274_v63  ;;  %1744 = vmatpush2.xpose.msra.mxu1 %v1274_v63 }
 0x34c   : > { %1346 = vmatprep.subr.mxu0 %v2895_v33  ;;  %1713 = vmatprep.subr.mxu1 %v2895_v33 }
 0x34f   : > { %1347 = vmatpush2.xpose.msra.mxu0 %v2898_v9  ;;  %1745 = vmatpush2.xpose.msra.mxu1 %v2898_v9 }
 0x350   : > { %1348 = vmatprep.subr.mxu0 %v1271_v36  ;;  %1714 = vmatprep.subr.mxu1 %v1271_v36 }
 0x353   : > { %1349 = vmatpush2.xpose.msra.mxu0 %v1270_v49  ;;  %1746 = vmatpush2.xpose.msra.mxu1 %v1270_v49 }
 0x354   : > { %1350 = vmatprep.subr.mxu0 %v1269_v38  ;;  %1715 = vmatprep.subr.mxu1 %v1269_v38 }
 0x357   : > { %1351 = vmatpush2.xpose.msra.mxu0 %v1268_v25  ;;  %1747 = vmatpush2.xpose.msra.mxu1 %v1268_v25 }
 0x368   : > { %v1127_v27 = vpop.xlane.xlu0 %1126 }
 0x369   : > { %1994 = vrcp.f32 %v1127_v27 }
 0x370   : > { %v1124_v52 = vpop.xlane.xlu1 %1123 }
 0x371   : > { %1996 = vrcp.f32 %v1124_v52 }
 0x376   : > { %v1995_v23 = vpop.eup %1994 }
 0x377   : > { %v1267_v24 = vmul.f32 %v1995_v23, %v2752_v62  ;;  %v1266_v0 = vmul.f32 %v1995_v23, %v2750_v16 }
 0x378   : > { %v1121_v15 = vpop.xlane.xlu0 %1120 }
 0x379   : > { %1998 = vrcp.f32 %v1121_v15  ;;  %1352 = vmatprep.subr.mxu0 %v1267_v24  ;;  %1416 = vst [vmem:[%s2709_s17 + $0x138] sm:$0xff] %v1267_v24  ;;  %1716 = vmatprep.subr.mxu1 %v1267_v24  ;;  %1415 = vst [vmem:[%s2709_s17 + $0x130] sm:$0xff] %v1266_v0 }
 0x37a   : > { %1353 = vmatpush2.xpose.msra.mxu0 %v1266_v0  ;;  %1748 = vmatpush2.xpose.msra.mxu1 %v1266_v0 }
 0x37e   : > { %v1997_v55 = vpop.eup %1996 }
 0x37f   : > { %v1265_v54 = vmul.f32 %v1997_v55, %v2781_v5  ;;  %v1264_v53 = vmul.f32 %v1997_v55, %v2778_v26 }
 0x380   : > { %v1118_v62 = vpop.xlane.xlu1 %1117 }
 0x381   : > { %2000 = vrcp.f32 %v1118_v62  ;;  %1354 = vmatprep.subr.mxu0 %v1265_v54  ;;  %1414 = vst [vmem:[%s2709_s17 + $0x128] sm:$0xff] %v1265_v54  ;;  %1717 = vmatprep.subr.mxu1 %v1265_v54  ;;  %1413 = vst [vmem:[%s2709_s17 + $0x120] sm:$0xff] %v1264_v53 }
 0x382   : > { %1355 = vmatpush2.xpose.msra.mxu0 %v1264_v53  ;;  %1749 = vmatpush2.xpose.msra.mxu1 %v1264_v53 }
 0x386   : > { %v1999_v16 = vpop.eup %1998 }
 0x387   : > { %v1263_v4 = vmul.f32 %v1999_v16, %v2804_v35  ;;  %v1262_v2 = vmul.f32 %v1999_v16, %v2802_v3  ;;  %v358_v3 = vld [vmem:[%s2866_s29] sm:$0xff]  ;;  %v360_v35 = vld [vmem:[%s2866_s29 + $0x10] sm:$0xff] }
 0x389   : > { %1356 = vmatprep.subr.mxu0 %v1263_v4  ;;  %1412 = vst [vmem:[%s2709_s17 + $0x118] sm:$0xff] %v1263_v4  ;;  %1718 = vmatprep.subr.mxu1 %v1263_v4  ;;  %1411 = vst [vmem:[%s2709_s17 + $0x110] sm:$0xff] %v1262_v2 }
 0x38a   : > { %1357 = vmatpush2.xpose.msra.mxu0 %v1262_v2  ;;  %1750 = vmatpush2.xpose.msra.mxu1 %v1262_v2 }
 0x38e   : > { %v2001_v26 = vpop.eup %2000 }
 0x38f   : > { %v1261_v5 = vmul.f32 %v2001_v26, %v2814_v13  ;;  %v1260_v58 = vmul.f32 %v2001_v26, %v2812_v11 }
 0x391   : > { %1358 = vmatprep.subr.mxu0 %v1261_v5  ;;  %1410 = vst [vmem:[%s2709_s17 + $0x108] sm:$0xff] %v1261_v5  ;;  %1719 = vmatprep.subr.mxu1 %v1261_v5  ;;  %1409 = vst [vmem:[%s2709_s17 + $0x100] sm:$0xff] %v1260_v58 }
 0x392   : > { %1359 = vmatpush2.xpose.msra.mxu0 %v1260_v58  ;;  %1751 = vmatpush2.xpose.msra.mxu1 %v1260_v58 }
 0x395   : > { %1361 = vmatmul.mubr.f32.vlgmr.msra.gmra.mxu0 %v358_v3  ;;  %1367 = vmatmul.mubr.f32.vlgmr.msra.gmra.mxu1 %v360_v35 }
 0x396   : > { %2015 = shalt.err (!%p2012_p5)
}
 0x397   : > { %s2016_s15 = scalar_lea.hbm %s2973_s11, 8192  ;;  %s2020_s27 = scalar_lea.hbm %s3037_s5, 16384 }
 0x398   : > { %p2017_p6 = scmp.ne.s32.totalorder %s2973_s11, %s2016_s15  ;;  %p2021_p10 = scmp.lt.s32.totalorder %s2973_s11, %s3037_s5 }
 0x399   : > { %p2022_p11 = scmp.lt.s32.totalorder %s2020_s27, %s2016_s15 }
 0x39a   : > { %p2018_p7 = pnand %p2017_p6, %p2154_p4 }
 0x39b   : > { %p2023_p12 = por %p2022_p11, %p2021_p10 }
 0x39c   : > { %p2019_p9 = pneg %p2018_p7 }
 0x39e   : > { %p2024_p13 = pnand %p2023_p12, %p2019_p9 }
 0x3a0   : > { %2027 = shalt.err (!%p2024_p13)
}
 0x3a1   : > { %s2082_s9 = smov 256   ;;  %s2083_s10 = smov 16  }
 0x3a2   : > { %1752 = dma.vmem_to_hbm [thread:$0]  (%p2154_p4), %s2975_s8, 8192, %s2973_s11, %s2979_s12, %s2082_s9, %s2082_s9, %s2083_s10  }
 0x3a3   : > { %s341_s14 = scalar_lea.vmem %s3035_s3, %s2851_s24  ;;  %s351_s17 = scalar_lea.vmem %s3036_s4, %s2851_s24 }
 0x3a4   : > { %v1292_v11 = vld [vmem:[%s341_s14] sm:$0xff]  ;;  %v1294_v13 = vld [vmem:[%s341_s14 + $0x10] sm:$0xff]  ;;  %v1293_v29 = vld [vmem:[%s341_s14 + $0x8] sm:$0xff] }
 0x3a5   : > { %v1295_v19 = vld [vmem:[%s341_s14 + $0x18] sm:$0xff] }
 0x455   : > { %v1362_v56 = vpop.f32.mrf.mxu0  ;;  %v1368_v61 = vpop.f32.mrf.mxu1 }
 0x456   : > { %v1363_v22 = vadd.f32 %v1362_v56, %v1292_v11  ;;  %v1369_v8 = vadd.f32 %v1368_v61, %v1294_v13 }
 0x457   : > { %v1364_v6 = vpop.f32.mrf.mxu0  ;;  %v1370_v48 = vpop.f32.mrf.mxu1 }
 0x458   : > { %1373 = vst [vmem:[%s351_s17] sm:$0xff] %v1363_v22  ;;  %1375 = vst [vmem:[%s351_s17 + $0x10] sm:$0xff] %v1369_v8  ;;  %v1365_v20 = vadd.f32 %v1364_v6, %v1293_v29  ;;  %v1371_v21 = vadd.f32 %v1370_v48, %v1295_v19 }
 0x45a   : > { %1374 = vst [vmem:[%s351_s17 + $0x8] sm:$0xff] %v1365_v20  ;;  %1376 = vst [vmem:[%s351_s17 + $0x18] sm:$0xff] %v1371_v21 }
 0x45b PF: > { %p1758_p4 = scmp.ge.s32.totalorder %s2078_s23, 2  ;;  %s1498_s28 = sand.u32 1, %s2058_s18  }
 0x45c   : > { %s1499_s24 = scalar_lea.sflag [#allocation3], %s1498_s28 }
 0x45d   : > { %p1755_p0 = pnand %p1758_p4, %p2161_p8 }
 0x45f   : > { %p1756_p1 = pneg %p1755_p0 }
 0x461   : > { %2053 = dma.done.wait (%p1756_p1), %s1499_s24, 8192  }
 0x462   : > { %2055 = vsyncadd (%p1756_p1), %s1499_s24, 4294959104  ;;  %s19_s23 = sadd.s32 1, %s2078_s23   ;;  %s3127_s18 = smov %s2062_s19 }
 0x463   : > { %p16_p2 = scmp.ge.s32.totalorder %s19_s23, 4   ;;  %s3128_s19 = smov %s2066_s20 }
 0x464   : > { %s3129_s20 = smov %s2167_s6  ;;  %s3130_s21 = smov %s2074_s22 }
 0x465   : > { %s3131_s22 = smov %s3133_s26  ;;  %18 = sbr.rel (!%p16_p2) target bundleno = 4 (0x4), region = 92 }
 0x46a   :  { %1504 = vsyncpa [#allocation3], 1 }
 0x46b   :  { %1506 = vsyncpa [#allocation3 + $0x1], 1 }

</bundles_post_ra>
